<compile_context>
chip_gen: v7x
topology: tpu7x:2x2x1
jax: 0.10.0
libtpu: 0.0.40
codegen_flags: <defaults>
</compile_context>

<pallas_src>
import functools

import jax
import jax.numpy as jnp
from jax.experimental import pallas as pl
from jax.experimental.pallas import tpu as pltpu


# Order of the 9 conv1 taps along the contraction dim; must match the piece
# order emitted by the kernel's conv1 patch builder.
_CONV1_TAP_ORDER = ((0, 1), (0, 2), (1, 1), (1, 2), (2, 1), (2, 2),
                    (0, 0), (1, 0), (2, 0))


def _round_up(x, m):
    return (x + m - 1) // m * m


def _shift_down(v):
    """out[i] = v[i - 1] along axis 0 (zero row at i == 0)."""
    return jnp.concatenate([jnp.zeros_like(v[:1]), v[:-1]], axis=0)


def _shift_right(v):
    """out[:, j] = v[:, j - 1] along axis 1 (zero column at j == 0)."""
    return jnp.concatenate([jnp.zeros_like(v[:, :1]), v[:, :-1]], axis=1)


# ---------------------------------------------------------------------------
# Fused kernel: conv1+ReLU+pool -> conv2+ReLU+pool -> flatten -> var.
# One image per grid step.
# ---------------------------------------------------------------------------
def _encoder_kernel(x_ref, w1_ref, b1_ref, w2_ref, b2_ref, var_ref,
                    *, cin, c1, c2, k1_pad, k2_pad):
    _, H2, _, W2, _ = x_ref.shape          # x_ref: (1, H/4, 4, W/4, 4*Cin) bf16
    mq = H2 * W2                           # conv2 output pixels per image
    xv = x_ref[0]                          # (H2, 4, W2, 4*Cin)

    # ---- conv1 (3x3, pad=1, stride 2) as ONE im2col matmul -----------------
    # Patch rows ordered (ry, cx, oh2, ow2): row m is the conv1 output at
    # stride-2 grid position (2*oh2 + ry, 2*ow2 + cx), so the four (ry, cx)
    # parity planes conv2 consumes are contiguous row blocks of the result.
    groups = []
    for ry in (0, 1):
        # Input rows for tap ky: 4*oh2 + (2*ry + ky - 1).
        rows = []
        for ky in (0, 1, 2):
            r = 2 * ry + ky - 1
            rows.append(xv[:, r] if r >= 0 else _shift_down(xv[:, 3]))
        for cx in (0, 1):
            pieces = []
            # Taps (ky, kx=1), (ky, kx=2): the contiguous 2*Cin lane pair.
            for ky in (0, 1, 2):
                pieces.append(rows[ky][:, :, 2 * cx * cin:(2 * cx + 2) * cin])
            # Tap (ky, kx=0): input column 4*ow2 + (2*cx - 1).
            for ky in (0, 1, 2):
                s = 2 * cx - 1
                if s >= 0:
                    pieces.append(rows[ky][:, :, s * cin:(s + 1) * cin])
                else:
                    pieces.append(_shift_right(rows[ky][:, :, 3 * cin:4 * cin]))
            if k1_pad > 9 * cin:             # lane-dense K padding (zero weights)
                pieces.append(jnp.zeros((H2, W2, k1_pad - 9 * cin), xv.dtype))
            grp = jnp.concatenate(pieces, axis=-1)        # (H2, W2, k1_pad)
            groups.append(grp.reshape(mq, k1_pad))        # lane-dense reshape
    patches1 = jnp.concatenate(groups, axis=0)            # (4*mq, k1_pad) bf16

    y1 = jnp.dot(patches1, w1_ref[...], preferred_element_type=jnp.float32)
    y1 = jnp.maximum(y1 + b1_ref[...], 0.0)                # (4*mq, c1) f32
    y1 = y1.astype(jnp.bfloat16)                           # conv2 MXU operand

    # ---- conv2 (3x3, pad=1, stride 2) as ONE im2col matmul -----------------
    # Parity planes: plane[(ry, cx)][i, j, :] = conv1 act at (2*i+ry, 2*j+cx).
    planes = {}
    for g, (ry, cx) in enumerate(((0, 0), (0, 1), (1, 0), (1, 1))):
        planes[(ry, cx)] = y1[g * mq:(g + 1) * mq].reshape(H2, W2, c1)

    pieces2 = []
    for ky in (0, 1, 2):                   # dy = ky - 1
        for kx in (0, 1, 2):               # dx = kx - 1
            dy, dx = ky - 1, kx - 1
            p = planes[(0 if dy == 0 else 1, 0 if dx == 0 else 1)]
            if dy < 0:
                p = _shift_down(p)
            if dx < 0:
                p = _shift_right(p)
            pieces2.append(p)
    if k2_pad > 9 * c1:
        pieces2.append(jnp.zeros((H2, W2, k2_pad - 9 * c1), jnp.bfloat16))
    patches2 = jnp.concatenate(pieces2, axis=-1).reshape(mq, k2_pad)

    y2 = jnp.dot(patches2, w2_ref[...], preferred_element_type=jnp.float32)
    y2 = jnp.maximum(y2 + b2_ref[...], 0.0)                # (mq, c2) f32

    # ---- flatten + unbiased variance (two-pass, f32) -----------------------
    n = float(mq * c2)
    mean = jnp.sum(jnp.sum(y2, axis=0, keepdims=True),
                   axis=1, keepdims=True) / n              # (1, 1)
    d = y2 - mean
    ssq = jnp.sum(jnp.sum(d * d, axis=0, keepdims=True),
                  axis=1, keepdims=True)                    # (1, 1)
    var_ref[0] = ssq / (n - 1.0)


# ---------------------------------------------------------------------------
# Wrappers.
# ---------------------------------------------------------------------------
def _vmem_limit_bytes():
    """<=48 MiB on 64 MiB parts (v7x), <=96 MiB on 128 MiB parts (v5e/v6e)."""
    default = 32 * 1024 * 1024                      # known-safe everywhere
    try:
        info = pltpu.get_tpu_info()
    except Exception:
        return default
    cap = None
    for name in ("vmem_capacity_bytes", "vmem_bytes", "vmem_size_bytes"):
        cap = getattr(info, name, None)
        if cap:
            break
    if not cap:
        return default
    return min(int(cap) * 3 // 4, 96 * 1024 * 1024)


def _pack_conv1_weights(w_hwio, k_pad):
    cin, cout = w_hwio.shape[2], w_hwio.shape[3]
    w = jnp.concatenate([w_hwio[ky, kx] for ky, kx in _CONV1_TAP_ORDER], axis=0)
    pad = k_pad - 9 * cin
    if pad:
        w = jnp.concatenate([w, jnp.zeros((pad, cout), w.dtype)], axis=0)
    return w.astype(jnp.bfloat16)


def _pack_conv2_weights(w_hwio, k_pad):
    cin, cout = w_hwio.shape[2], w_hwio.shape[3]
    w = w_hwio.reshape(9 * cin, cout)      # (ky, kx) row-major == kernel order
    pad = k_pad - 9 * cin
    if pad:
        w = jnp.concatenate([w, jnp.zeros((pad, cout), w.dtype)], axis=0)
    return w.astype(jnp.bfloat16)


def image_encoder_forward(x_nchw, params):
    B, Cin, H, W = x_nchw.shape
    assert H % 4 == 0 and W % 4 == 0, "spatial dims must be divisible by 4"
    C1 = params["w1"].shape[-1]
    C2 = params["w2"].shape[-1]
    H2, W2 = H // 4, W // 4
    K1p = _round_up(9 * Cin, 128)          # 36 -> 128
    K2p = _round_up(9 * C1, 128)           # 576 -> 640

    # NCHW -> NHWC, cast to bf16 (halves the DMA-bound conv1 input stream) and
    # repack as (B, H/4, 4, W/4, 4*Cin): a free contiguous HBM reshape that
    # turns both stride-2 selections into static lane / major slices in-kernel.
    x = jnp.transpose(x_nchw, (0, 2, 3, 1)).astype(jnp.bfloat16)
    xq = x.reshape(B, H2, 4, W2, 4 * Cin)

    w1 = _pack_conv1_weights(params["w1"], K1p)             # (K1p, C1) bf16
    b1 = params["b1"].reshape(1, C1).astype(jnp.float32)
    w2 = _pack_conv2_weights(params["w2"], K2p)             # (K2p, C2) bf16
    b2 = params["b2"].reshape(1, C2).astype(jnp.float32)

    m1, m2 = (H // 2) * (W // 2), H2 * W2
    flops = 2 * B * (m1 * K1p * C1 + m2 * K2p * C2) + 6 * B * m2 * C2
    bytes_accessed = (xq.size * 2 + w1.size * 2 + w2.size * 2
                      + (b1.size + b2.size) * 4 + B * 4)

    kernel = functools.partial(_encoder_kernel, cin=Cin, c1=C1, c2=C2,
                               k1_pad=K1p, k2_pad=K2p)

    var_b = pl.pallas_call(
        kernel,
        out_shape=jax.ShapeDtypeStruct((B, 1, 1), jnp.float32),
        grid_spec=pltpu.PrefetchScalarGridSpec(
            num_scalar_prefetch=0,
            grid=(B,),
            in_specs=[
                pl.BlockSpec((1, H2, 4, W2, 4 * Cin), lambda bi: (bi, 0, 0, 0, 0)),
                pl.BlockSpec((K1p, C1), lambda bi: (0, 0)),
                pl.BlockSpec((1, C1), lambda bi: (0, 0)),
                pl.BlockSpec((K2p, C2), lambda bi: (0, 0)),
                pl.BlockSpec((1, C2), lambda bi: (0, 0)),
            ],
            out_specs=pl.BlockSpec((1, 1, 1), lambda bi: (bi, 0, 0)),
        ),
        compiler_params=pltpu.CompilerParams(
            dimension_semantics=("parallel",),
            vmem_limit_bytes=_vmem_limit_bytes()),
        cost_estimate=pl.CostEstimate(flops=flops, transcendentals=0,
                                      bytes_accessed=bytes_accessed),
    )(xq, w1, b1, w2, b2)

    # torch.var(flatten(x), dim=1) (unbiased, per image) then .mean() over batch.
    return jnp.mean(var_b)


def init_params(key, input_channels):
    # Deterministic synthetic parameters (shapes from the module's __init__),
    # stored in HWIO layout for the NHWC kernels.
    k1, k2, k3, k4 = jax.random.split(key, 4)
    w1 = jax.random.normal(k1, (3, 3, input_channels, 64), jnp.float32) * 0.1
    b1 = jax.random.normal(k2, (64,), jnp.float32) * 0.01
    w2 = jax.random.normal(k3, (3, 3, 64, 128), jnp.float32) * 0.05
    b2 = jax.random.normal(k4, (128,), jnp.float32) * 0.01
    # NOTE: self.fc_variance (nn.Linear) is defined in __init__ but never used
    # in forward(), so no parameters are created for it.
    return dict(w1=w1, b1=b1, w2=w2, b2=b2)


def reference_forward(x_nchw, params, compute_dtype=jnp.float32):
    """Pure-JAX reference. compute_dtype controls the matmul operand precision
    (f32 == the PyTorch module's arithmetic; bf16 mirrors the kernel)."""
    dn = ("NHWC", "HWIO", "NHWC")
    cd = compute_dtype
    x = jnp.transpose(x_nchw, (0, 2, 3, 1)).astype(cd)
    y = jax.lax.conv_general_dilated(x, params["w1"].astype(cd), (1, 1), "SAME",
                                     dimension_numbers=dn,
                                     preferred_element_type=jnp.float32)
    y = jnp.maximum(y + params["b1"], 0.0)[:, ::2, ::2, :].astype(cd)
    y = jax.lax.conv_general_dilated(y, params["w2"].astype(cd), (1, 1), "SAME",
                                     dimension_numbers=dn,
                                     preferred_element_type=jnp.float32)
    y = jnp.maximum(y + params["b2"], 0.0)[:, ::2, ::2, :]
    flat = y.reshape(y.shape[0], -1)
    return jnp.var(flat, axis=1, ddof=1).mean()


if __name__ == "__main__":
    key = jax.random.PRNGKey(0)
    kx, kp = jax.random.split(key)
    B, C, H, W = 2, 4, 16, 16                                # small NCHW input
    x = jax.random.normal(kx, (B, C, H, W), jnp.float32)
    params = init_params(kp, C)

    fwd = jax.jit(image_encoder_forward)
    out = jax.block_until_ready(fwd(x, params))

    # Like-for-like reference (bf16 matmul operands, f32 accumulation) -> tight.
    ref_bf16 = reference_forward(x, params, compute_dtype=jnp.bfloat16)
    # Full-f32 reference (== PyTorch module arithmetic) -> loose (bf16 operands).
    ref_f32 = reference_forward(x, params, compute_dtype=jnp.float32)

    assert jnp.allclose(out, ref_bf16, rtol=2e-3, atol=2e-3), (out, ref_bf16)
    assert jnp.allclose(out, ref_f32, rtol=3e-2, atol=1e-3), (out, ref_f32)
    print("KERNEL_OK")
</pallas_src>

<mosaic_0001>
module attributes {stable_mosaic.version = 11 : i64} {
  func.func @_encoder_kernel(%arg0: i32, %arg1: memref<1x4x4x4x16xbf16, #tpu.memory_space<vmem>>, %arg2: memref<128x64xbf16, #tpu.memory_space<vmem>>, %arg3: memref<1x64xf32, #tpu.memory_space<vmem>>, %arg4: memref<640x128xbf16, #tpu.memory_space<vmem>>, %arg5: memref<1x128xf32, #tpu.memory_space<vmem>>, %arg6: memref<1x1x1xf32, #tpu.memory_space<vmem>>) attributes {dimension_semantics = [#tpu.dimension_semantics<parallel>], iteration_bounds = array<i64: 2>, scalar_prefetch = 0 : i64, scratch_operands = 0 : i64, tpu.core_type = #tpu.core_type<tc>, window_params = [{transform_indices = @transform_0, window_bounds = array<i64: 1, 4, 4, 4, 16>}, {pipeline_mode = #tpu.pipeline_mode<synchronous>, transform_indices = @transform_1, window_bounds = array<i64: 128, 64>}, {pipeline_mode = #tpu.pipeline_mode<synchronous>, transform_indices = @transform_2, window_bounds = array<i64: 1, 64>}, {pipeline_mode = #tpu.pipeline_mode<synchronous>, transform_indices = @transform_3, window_bounds = array<i64: 640, 128>}, {pipeline_mode = #tpu.pipeline_mode<synchronous>, transform_indices = @transform_4, window_bounds = array<i64: 1, 128>}, {transform_indices = @transform_5, window_bounds = array<i64: 1, 1, 1>}]} {
    %c0 = arith.constant 0 : index
    %c0_0 = arith.constant 0 : index
    %c0_1 = arith.constant 0 : index
    %c0_2 = arith.constant 0 : index
    %c0_3 = arith.constant 0 : index
    %0 = vector.load %arg1[%c0, %c0_0, %c0_1, %c0_2, %c0_3] : memref<1x4x4x4x16xbf16, #tpu.memory_space<vmem>>, vector<1x4x4x4x16xbf16>
    %1 = vector.shape_cast %0 : vector<1x4x4x4x16xbf16> to vector<4x4x4x16xbf16>
    %2 = vector.extract_strided_slice %1 {offsets = [0, 3, 0, 0], sizes = [4, 1, 4, 16], strides = [1, 1, 1, 1]} : vector<4x4x4x16xbf16> to vector<4x1x4x16xbf16>
    %3 = vector.shape_cast %2 : vector<4x1x4x16xbf16> to vector<4x4x16xbf16>
    %cst = arith.constant 0.000000e+00 : bf16
    %4 = vector.broadcast %cst : bf16 to vector<1x4x16xbf16>
    %5 = vector.extract_strided_slice %3 {offsets = [0, 0, 0], sizes = [3, 4, 16], strides = [1, 1, 1]} : vector<4x4x16xbf16> to vector<3x4x16xbf16>
    %6 = tpu.concatenate %4, %5 in 0 : vector<1x4x16xbf16>, vector<3x4x16xbf16> -> vector<4x4x16xbf16>
    %7 = vector.extract_strided_slice %1 {offsets = [0, 0, 0, 0], sizes = [4, 1, 4, 16], strides = [1, 1, 1, 1]} : vector<4x4x4x16xbf16> to vector<4x1x4x16xbf16>
    %8 = vector.shape_cast %7 : vector<4x1x4x16xbf16> to vector<4x4x16xbf16>
    %9 = vector.extract_strided_slice %1 {offsets = [0, 1, 0, 0], sizes = [4, 1, 4, 16], strides = [1, 1, 1, 1]} : vector<4x4x4x16xbf16> to vector<4x1x4x16xbf16>
    %10 = vector.shape_cast %9 : vector<4x1x4x16xbf16> to vector<4x4x16xbf16>
    %11 = vector.extract_strided_slice %6 {offsets = [0, 0, 0], sizes = [4, 4, 8], strides = [1, 1, 1]} : vector<4x4x16xbf16> to vector<4x4x8xbf16>
    %12 = vector.extract_strided_slice %8 {offsets = [0, 0, 0], sizes = [4, 4, 8], strides = [1, 1, 1]} : vector<4x4x16xbf16> to vector<4x4x8xbf16>
    %13 = vector.extract_strided_slice %10 {offsets = [0, 0, 0], sizes = [4, 4, 8], strides = [1, 1, 1]} : vector<4x4x16xbf16> to vector<4x4x8xbf16>
    %14 = vector.extract_strided_slice %6 {offsets = [0, 0, 12], sizes = [4, 4, 4], strides = [1, 1, 1]} : vector<4x4x16xbf16> to vector<4x4x4xbf16>
    %cst_4 = arith.constant 0.000000e+00 : bf16
    %15 = vector.broadcast %cst_4 : bf16 to vector<4x1x4xbf16>
    %16 = vector.extract_strided_slice %14 {offsets = [0, 0, 0], sizes = [4, 3, 4], strides = [1, 1, 1]} : vector<4x4x4xbf16> to vector<4x3x4xbf16>
    %17 = tpu.concatenate %15, %16 in 1 : vector<4x1x4xbf16>, vector<4x3x4xbf16> -> vector<4x4x4xbf16>
    %18 = vector.extract_strided_slice %8 {offsets = [0, 0, 12], sizes = [4, 4, 4], strides = [1, 1, 1]} : vector<4x4x16xbf16> to vector<4x4x4xbf16>
    %cst_5 = arith.constant 0.000000e+00 : bf16
    %19 = vector.broadcast %cst_5 : bf16 to vector<4x1x4xbf16>
    %20 = vector.extract_strided_slice %18 {offsets = [0, 0, 0], sizes = [4, 3, 4], strides = [1, 1, 1]} : vector<4x4x4xbf16> to vector<4x3x4xbf16>
    %21 = tpu.concatenate %19, %20 in 1 : vector<4x1x4xbf16>, vector<4x3x4xbf16> -> vector<4x4x4xbf16>
    %22 = vector.extract_strided_slice %10 {offsets = [0, 0, 12], sizes = [4, 4, 4], strides = [1, 1, 1]} : vector<4x4x16xbf16> to vector<4x4x4xbf16>
    %cst_6 = arith.constant 0.000000e+00 : bf16
    %23 = vector.broadcast %cst_6 : bf16 to vector<4x1x4xbf16>
    %24 = vector.extract_strided_slice %22 {offsets = [0, 0, 0], sizes = [4, 3, 4], strides = [1, 1, 1]} : vector<4x4x4xbf16> to vector<4x3x4xbf16>
    %25 = tpu.concatenate %23, %24 in 1 : vector<4x1x4xbf16>, vector<4x3x4xbf16> -> vector<4x4x4xbf16>
    %cst_7 = arith.constant 0.000000e+00 : bf16
    %26 = vector.broadcast %cst_7 : bf16 to vector<4x4x92xbf16>
    %27 = tpu.concatenate %11, %12, %13, %17, %21, %25, %26 in 2 : vector<4x4x8xbf16>, vector<4x4x8xbf16>, vector<4x4x8xbf16>, vector<4x4x4xbf16>, vector<4x4x4xbf16>, vector<4x4x4xbf16>, vector<4x4x92xbf16> -> vector<4x4x128xbf16>
    %28 = vector.shape_cast %27 : vector<4x4x128xbf16> to vector<16x128xbf16>
    %29 = vector.extract_strided_slice %6 {offsets = [0, 0, 8], sizes = [4, 4, 8], strides = [1, 1, 1]} : vector<4x4x16xbf16> to vector<4x4x8xbf16>
    %30 = vector.extract_strided_slice %8 {offsets = [0, 0, 8], sizes = [4, 4, 8], strides = [1, 1, 1]} : vector<4x4x16xbf16> to vector<4x4x8xbf16>
    %31 = vector.extract_strided_slice %10 {offsets = [0, 0, 8], sizes = [4, 4, 8], strides = [1, 1, 1]} : vector<4x4x16xbf16> to vector<4x4x8xbf16>
    %32 = vector.extract_strided_slice %6 {offsets = [0, 0, 4], sizes = [4, 4, 4], strides = [1, 1, 1]} : vector<4x4x16xbf16> to vector<4x4x4xbf16>
    %33 = vector.extract_strided_slice %8 {offsets = [0, 0, 4], sizes = [4, 4, 4], strides = [1, 1, 1]} : vector<4x4x16xbf16> to vector<4x4x4xbf16>
    %34 = vector.extract_strided_slice %10 {offsets = [0, 0, 4], sizes = [4, 4, 4], strides = [1, 1, 1]} : vector<4x4x16xbf16> to vector<4x4x4xbf16>
    %cst_8 = arith.constant 0.000000e+00 : bf16
    %35 = vector.broadcast %cst_8 : bf16 to vector<4x4x92xbf16>
    %36 = tpu.concatenate %29, %30, %31, %32, %33, %34, %35 in 2 : vector<4x4x8xbf16>, vector<4x4x8xbf16>, vector<4x4x8xbf16>, vector<4x4x4xbf16>, vector<4x4x4xbf16>, vector<4x4x4xbf16>, vector<4x4x92xbf16> -> vector<4x4x128xbf16>
    %37 = vector.shape_cast %36 : vector<4x4x128xbf16> to vector<16x128xbf16>
    %38 = vector.extract_strided_slice %1 {offsets = [0, 1, 0, 0], sizes = [4, 1, 4, 16], strides = [1, 1, 1, 1]} : vector<4x4x4x16xbf16> to vector<4x1x4x16xbf16>
    %39 = vector.shape_cast %38 : vector<4x1x4x16xbf16> to vector<4x4x16xbf16>
    %40 = vector.extract_strided_slice %1 {offsets = [0, 2, 0, 0], sizes = [4, 1, 4, 16], strides = [1, 1, 1, 1]} : vector<4x4x4x16xbf16> to vector<4x1x4x16xbf16>
    %41 = vector.shape_cast %40 : vector<4x1x4x16xbf16> to vector<4x4x16xbf16>
    %42 = vector.extract_strided_slice %1 {offsets = [0, 3, 0, 0], sizes = [4, 1, 4, 16], strides = [1, 1, 1, 1]} : vector<4x4x4x16xbf16> to vector<4x1x4x16xbf16>
    %43 = vector.shape_cast %42 : vector<4x1x4x16xbf16> to vector<4x4x16xbf16>
    %44 = vector.extract_strided_slice %39 {offsets = [0, 0, 0], sizes = [4, 4, 8], strides = [1, 1, 1]} : vector<4x4x16xbf16> to vector<4x4x8xbf16>
    %45 = vector.extract_strided_slice %41 {offsets = [0, 0, 0], sizes = [4, 4, 8], strides = [1, 1, 1]} : vector<4x4x16xbf16> to vector<4x4x8xbf16>
    %46 = vector.extract_strided_slice %43 {offsets = [0, 0, 0], sizes = [4, 4, 8], strides = [1, 1, 1]} : vector<4x4x16xbf16> to vector<4x4x8xbf16>
    %47 = vector.extract_strided_slice %39 {offsets = [0, 0, 12], sizes = [4, 4, 4], strides = [1, 1, 1]} : vector<4x4x16xbf16> to vector<4x4x4xbf16>
    %cst_9 = arith.constant 0.000000e+00 : bf16
    %48 = vector.broadcast %cst_9 : bf16 to vector<4x1x4xbf16>
    %49 = vector.extract_strided_slice %47 {offsets = [0, 0, 0], sizes = [4, 3, 4], strides = [1, 1, 1]} : vector<4x4x4xbf16> to vector<4x3x4xbf16>
    %50 = tpu.concatenate %48, %49 in 1 : vector<4x1x4xbf16>, vector<4x3x4xbf16> -> vector<4x4x4xbf16>
    %51 = vector.extract_strided_slice %41 {offsets = [0, 0, 12], sizes = [4, 4, 4], strides = [1, 1, 1]} : vector<4x4x16xbf16> to vector<4x4x4xbf16>
    %cst_10 = arith.constant 0.000000e+00 : bf16
    %52 = vector.broadcast %cst_10 : bf16 to vector<4x1x4xbf16>
    %53 = vector.extract_strided_slice %51 {offsets = [0, 0, 0], sizes = [4, 3, 4], strides = [1, 1, 1]} : vector<4x4x4xbf16> to vector<4x3x4xbf16>
    %54 = tpu.concatenate %52, %53 in 1 : vector<4x1x4xbf16>, vector<4x3x4xbf16> -> vector<4x4x4xbf16>
    %55 = vector.extract_strided_slice %43 {offsets = [0, 0, 12], sizes = [4, 4, 4], strides = [1, 1, 1]} : vector<4x4x16xbf16> to vector<4x4x4xbf16>
    %cst_11 = arith.constant 0.000000e+00 : bf16
    %56 = vector.broadcast %cst_11 : bf16 to vector<4x1x4xbf16>
    %57 = vector.extract_strided_slice %55 {offsets = [0, 0, 0], sizes = [4, 3, 4], strides = [1, 1, 1]} : vector<4x4x4xbf16> to vector<4x3x4xbf16>
    %58 = tpu.concatenate %56, %57 in 1 : vector<4x1x4xbf16>, vector<4x3x4xbf16> -> vector<4x4x4xbf16>
    %cst_12 = arith.constant 0.000000e+00 : bf16
    %59 = vector.broadcast %cst_12 : bf16 to vector<4x4x92xbf16>
    %60 = tpu.concatenate %44, %45, %46, %50, %54, %58, %59 in 2 : vector<4x4x8xbf16>, vector<4x4x8xbf16>, vector<4x4x8xbf16>, vector<4x4x4xbf16>, vector<4x4x4xbf16>, vector<4x4x4xbf16>, vector<4x4x92xbf16> -> vector<4x4x128xbf16>
    %61 = vector.shape_cast %60 : vector<4x4x128xbf16> to vector<16x128xbf16>
    %62 = vector.extract_strided_slice %39 {offsets = [0, 0, 8], sizes = [4, 4, 8], strides = [1, 1, 1]} : vector<4x4x16xbf16> to vector<4x4x8xbf16>
    %63 = vector.extract_strided_slice %41 {offsets = [0, 0, 8], sizes = [4, 4, 8], strides = [1, 1, 1]} : vector<4x4x16xbf16> to vector<4x4x8xbf16>
    %64 = vector.extract_strided_slice %43 {offsets = [0, 0, 8], sizes = [4, 4, 8], strides = [1, 1, 1]} : vector<4x4x16xbf16> to vector<4x4x8xbf16>
    %65 = vector.extract_strided_slice %39 {offsets = [0, 0, 4], sizes = [4, 4, 4], strides = [1, 1, 1]} : vector<4x4x16xbf16> to vector<4x4x4xbf16>
    %66 = vector.extract_strided_slice %41 {offsets = [0, 0, 4], sizes = [4, 4, 4], strides = [1, 1, 1]} : vector<4x4x16xbf16> to vector<4x4x4xbf16>
    %67 = vector.extract_strided_slice %43 {offsets = [0, 0, 4], sizes = [4, 4, 4], strides = [1, 1, 1]} : vector<4x4x16xbf16> to vector<4x4x4xbf16>
    %cst_13 = arith.constant 0.000000e+00 : bf16
    %68 = vector.broadcast %cst_13 : bf16 to vector<4x4x92xbf16>
    %69 = tpu.concatenate %62, %63, %64, %65, %66, %67, %68 in 2 : vector<4x4x8xbf16>, vector<4x4x8xbf16>, vector<4x4x8xbf16>, vector<4x4x4xbf16>, vector<4x4x4xbf16>, vector<4x4x4xbf16>, vector<4x4x92xbf16> -> vector<4x4x128xbf16>
    %70 = vector.shape_cast %69 : vector<4x4x128xbf16> to vector<16x128xbf16>
    %71 = tpu.concatenate %28, %37, %61, %70 in 0 : vector<16x128xbf16>, vector<16x128xbf16>, vector<16x128xbf16>, vector<16x128xbf16> -> vector<64x128xbf16>
    %c0_14 = arith.constant 0 : index
    %c0_15 = arith.constant 0 : index
    %72 = vector.load %arg2[%c0_14, %c0_15] : memref<128x64xbf16, #tpu.memory_space<vmem>>, vector<128x64xbf16>
    %cst_16 = arith.constant dense<0.000000e+00> : vector<64x64xf32>
    %73 = tpu.matmul %71, %72, %cst_16 {dimension_numbers = #tpu.dot_dimension_numbers<[1], [0], [0], [1], [0, 0, 1, 1], [], []>} : vector<64x128xbf16>, vector<128x64xbf16>, vector<64x64xf32> -> vector<64x64xf32>
    %c0_17 = arith.constant 0 : index
    %c0_18 = arith.constant 0 : index
    %74 = vector.load %arg3[%c0_17, %c0_18] : memref<1x64xf32, #tpu.memory_space<vmem>>, vector<1x64xf32>
    %75 = vector.broadcast %74 : vector<1x64xf32> to vector<64x64xf32>
    %76 = arith.addf %73, %75 : vector<64x64xf32>
    %cst_19 = arith.constant 0.000000e+00 : f32
    %77 = vector.broadcast %cst_19 : f32 to vector<64x64xf32>
    %78 = arith.maximumf %76, %77 : vector<64x64xf32>
    %79 = arith.truncf %78 : vector<64x64xf32> to vector<64x64xbf16>
    %80 = vector.extract_strided_slice %79 {offsets = [0, 0], sizes = [16, 64], strides = [1, 1]} : vector<64x64xbf16> to vector<16x64xbf16>
    %81 = vector.shape_cast %80 : vector<16x64xbf16> to vector<4x4x64xbf16>
    %82 = vector.extract_strided_slice %79 {offsets = [16, 0], sizes = [16, 64], strides = [1, 1]} : vector<64x64xbf16> to vector<16x64xbf16>
    %83 = vector.shape_cast %82 : vector<16x64xbf16> to vector<4x4x64xbf16>
    %84 = vector.extract_strided_slice %79 {offsets = [32, 0], sizes = [16, 64], strides = [1, 1]} : vector<64x64xbf16> to vector<16x64xbf16>
    %85 = vector.shape_cast %84 : vector<16x64xbf16> to vector<4x4x64xbf16>
    %86 = vector.extract_strided_slice %79 {offsets = [48, 0], sizes = [16, 64], strides = [1, 1]} : vector<64x64xbf16> to vector<16x64xbf16>
    %87 = vector.shape_cast %86 : vector<16x64xbf16> to vector<4x4x64xbf16>
    %cst_20 = arith.constant 0.000000e+00 : bf16
    %88 = vector.broadcast %cst_20 : bf16 to vector<1x4x64xbf16>
    %89 = vector.extract_strided_slice %87 {offsets = [0, 0, 0], sizes = [3, 4, 64], strides = [1, 1, 1]} : vector<4x4x64xbf16> to vector<3x4x64xbf16>
    %90 = tpu.concatenate %88, %89 in 0 : vector<1x4x64xbf16>, vector<3x4x64xbf16> -> vector<4x4x64xbf16>
    %cst_21 = arith.constant 0.000000e+00 : bf16
    %91 = vector.broadcast %cst_21 : bf16 to vector<4x1x64xbf16>
    %92 = vector.extract_strided_slice %90 {offsets = [0, 0, 0], sizes = [4, 3, 64], strides = [1, 1, 1]} : vector<4x4x64xbf16> to vector<4x3x64xbf16>
    %93 = tpu.concatenate %91, %92 in 1 : vector<4x1x64xbf16>, vector<4x3x64xbf16> -> vector<4x4x64xbf16>
    %cst_22 = arith.constant 0.000000e+00 : bf16
    %94 = vector.broadcast %cst_22 : bf16 to vector<1x4x64xbf16>
    %95 = vector.extract_strided_slice %85 {offsets = [0, 0, 0], sizes = [3, 4, 64], strides = [1, 1, 1]} : vector<4x4x64xbf16> to vector<3x4x64xbf16>
    %96 = tpu.concatenate %94, %95 in 0 : vector<1x4x64xbf16>, vector<3x4x64xbf16> -> vector<4x4x64xbf16>
    %cst_23 = arith.constant 0.000000e+00 : bf16
    %97 = vector.broadcast %cst_23 : bf16 to vector<1x4x64xbf16>
    %98 = vector.extract_strided_slice %87 {offsets = [0, 0, 0], sizes = [3, 4, 64], strides = [1, 1, 1]} : vector<4x4x64xbf16> to vector<3x4x64xbf16>
    %99 = tpu.concatenate %97, %98 in 0 : vector<1x4x64xbf16>, vector<3x4x64xbf16> -> vector<4x4x64xbf16>
    %cst_24 = arith.constant 0.000000e+00 : bf16
    %100 = vector.broadcast %cst_24 : bf16 to vector<4x1x64xbf16>
    %101 = vector.extract_strided_slice %83 {offsets = [0, 0, 0], sizes = [4, 3, 64], strides = [1, 1, 1]} : vector<4x4x64xbf16> to vector<4x3x64xbf16>
    %102 = tpu.concatenate %100, %101 in 1 : vector<4x1x64xbf16>, vector<4x3x64xbf16> -> vector<4x4x64xbf16>
    %cst_25 = arith.constant 0.000000e+00 : bf16
    %103 = vector.broadcast %cst_25 : bf16 to vector<4x1x64xbf16>
    %104 = vector.extract_strided_slice %87 {offsets = [0, 0, 0], sizes = [4, 3, 64], strides = [1, 1, 1]} : vector<4x4x64xbf16> to vector<4x3x64xbf16>
    %105 = tpu.concatenate %103, %104 in 1 : vector<4x1x64xbf16>, vector<4x3x64xbf16> -> vector<4x4x64xbf16>
    %cst_26 = arith.constant 0.000000e+00 : bf16
    %106 = vector.broadcast %cst_26 : bf16 to vector<4x4x64xbf16>
    %107 = tpu.concatenate %93, %96, %99, %102, %81, %83, %105, %85, %87, %106 in 2 : vector<4x4x64xbf16>, vector<4x4x64xbf16>, vector<4x4x64xbf16>, vector<4x4x64xbf16>, vector<4x4x64xbf16>, vector<4x4x64xbf16>, vector<4x4x64xbf16>, vector<4x4x64xbf16>, vector<4x4x64xbf16>, vector<4x4x64xbf16> -> vector<4x4x640xbf16>
    %108 = vector.shape_cast %107 : vector<4x4x640xbf16> to vector<16x640xbf16>
    %c0_27 = arith.constant 0 : index
    %c0_28 = arith.constant 0 : index
    %109 = vector.load %arg4[%c0_27, %c0_28] : memref<640x128xbf16, #tpu.memory_space<vmem>>, vector<640x128xbf16>
    %cst_29 = arith.constant dense<0.000000e+00> : vector<16x128xf32>
    %110 = tpu.matmul %108, %109, %cst_29 {dimension_numbers = #tpu.dot_dimension_numbers<[1], [0], [0], [1], [0, 0, 1, 1], [], []>} : vector<16x640xbf16>, vector<640x128xbf16>, vector<16x128xf32> -> vector<16x128xf32>
    %c0_30 = arith.constant 0 : index
    %c0_31 = arith.constant 0 : index
    %111 = vector.load %arg5[%c0_30, %c0_31] : memref<1x128xf32, #tpu.memory_space<vmem>>, vector<1x128xf32>
    %112 = vector.broadcast %111 : vector<1x128xf32> to vector<16x128xf32>
    %113 = arith.addf %110, %112 : vector<16x128xf32>
    %cst_32 = arith.constant 0.000000e+00 : f32
    %114 = vector.broadcast %cst_32 : f32 to vector<16x128xf32>
    %115 = arith.maximumf %113, %114 : vector<16x128xf32>
    %cst_33 = arith.constant dense<0.000000e+00> : vector<128xf32>
    %116 = vector.multi_reduction <add>, %115, %cst_33 [0] : vector<16x128xf32> to vector<128xf32>
    %117 = vector.shape_cast %116 : vector<128xf32> to vector<1x128xf32>
    %cst_34 = arith.constant dense<0.000000e+00> : vector<1xf32>
    %118 = vector.multi_reduction <add>, %117, %cst_34 [1] : vector<1x128xf32> to vector<1xf32>
    %119 = vector.shape_cast %118 : vector<1xf32> to vector<1x1xf32>
    %cst_35 = arith.constant 2.048000e+03 : f32
    %120 = vector.broadcast %cst_35 : f32 to vector<1x1xf32>
    %121 = arith.divf %119, %120 : vector<1x1xf32>
    %122 = vector.broadcast %121 : vector<1x1xf32> to vector<16x128xf32>
    %123 = arith.subf %115, %122 : vector<16x128xf32>
    %124 = arith.mulf %123, %123 : vector<16x128xf32>
    %cst_36 = arith.constant dense<0.000000e+00> : vector<128xf32>
    %125 = vector.multi_reduction <add>, %124, %cst_36 [0] : vector<16x128xf32> to vector<128xf32>
    %126 = vector.shape_cast %125 : vector<128xf32> to vector<1x128xf32>
    %cst_37 = arith.constant dense<0.000000e+00> : vector<1xf32>
    %127 = vector.multi_reduction <add>, %126, %cst_37 [1] : vector<1x128xf32> to vector<1xf32>
    %128 = vector.shape_cast %127 : vector<1xf32> to vector<1x1xf32>
    %cst_38 = arith.constant 2.047000e+03 : f32
    %129 = vector.broadcast %cst_38 : f32 to vector<1x1xf32>
    %130 = arith.divf %128, %129 : vector<1x1xf32>
    %c0_39 = arith.constant 0 : index
    %c0_40 = arith.constant 0 : index
    %c0_41 = arith.constant 0 : index
    %131 = vector.load %arg6[%c0_39, %c0_40, %c0_41] : memref<1x1x1xf32, #tpu.memory_space<vmem>>, vector<1x1x1xf32>
    %132 = vector.shape_cast %131 : vector<1x1x1xf32> to vector<1x1xf32>
    %133 = vector.shape_cast %130 : vector<1x1xf32> to vector<1x1x1xf32>
    tpu.vector_store %arg6[%c0_39, %c0_40, %c0_41], %133 {strides = array<i32>} : memref<1x1x1xf32, #tpu.memory_space<vmem>>, vector<1x1x1xf32>,
    return
  }
  func.func @transform_0(%arg0: i32) -> (i32, i32, i32, i32, i32) {
    %c0_i32 = arith.constant 0 : i32
    %c0_i32_0 = arith.constant 0 : i32
    %c0_i32_1 = arith.constant 0 : i32
    %c0_i32_2 = arith.constant 0 : i32
    %c0_i32_3 = arith.constant 0 : i32
    return %arg0, %c0_i32, %c0_i32_0, %c0_i32_1, %c0_i32_2 : i32, i32, i32, i32, i32
  }
  func.func @transform_1(%arg0: i32) -> (i32, i32) {
    %c0_i32 = arith.constant 0 : i32
    %c0_i32_0 = arith.constant 0 : i32
    %c0_i32_1 = arith.constant 0 : i32
    return %c0_i32, %c0_i32_0 : i32, i32
  }
  func.func @transform_2(%arg0: i32) -> (i32, i32) {
    %c0_i32 = arith.constant 0 : i32
    %c0_i32_0 = arith.constant 0 : i32
    %c0_i32_1 = arith.constant 0 : i32
    return %c0_i32, %c0_i32_0 : i32, i32
  }
  func.func @transform_3(%arg0: i32) -> (i32, i32) {
    %c0_i32 = arith.constant 0 : i32
    %c0_i32_0 = arith.constant 0 : i32
    %c0_i32_1 = arith.constant 0 : i32
    return %c0_i32, %c0_i32_0 : i32, i32
  }
  func.func @transform_4(%arg0: i32) -> (i32, i32) {
    %c0_i32 = arith.constant 0 : i32
    %c0_i32_0 = arith.constant 0 : i32
    %c0_i32_1 = arith.constant 0 : i32
    return %c0_i32, %c0_i32_0 : i32, i32
  }
  func.func @transform_5(%arg0: i32) -> (i32, i32, i32) {
    %c0_i32 = arith.constant 0 : i32
    %c0_i32_0 = arith.constant 0 : i32
    %c0_i32_1 = arith.constant 0 : i32
    return %arg0, %c0_i32, %c0_i32_0 : i32, i32, i32
  }
}

</mosaic_0001>

<bundles_post_ra>
// kernel: image_encoder_forward.1
= control target key start
LH: loop header
LB: loop body
LE: loop exit
PB: predicated region body
PF: predicated region fallthrough
CT: control target
= control target key end

     0   :  { %s2542_s18 = smov 0   ;;  %s3398_s0 = inlined_call_operand.vmem [shape: bf16[2,4,4,4,16], index: 0, kind: input, shape index: {}]   ;;  %s3399_s1 = inlined_call_operand.vmem [shape: bf16[128,64], index: 1, kind: input, shape index: {}]   ;;  %s3400_s2 = inlined_call_operand.vmem [shape: f32[1,64], index: 2, kind: input, shape index: {}]   ;;  %s3401_s3 = inlined_call_operand.vmem [shape: bf16[640,128], index: 3, kind: input, shape index: {}]   ;;  %s3402_s4 = inlined_call_operand.vmem [shape: f32[1,128], index: 4, kind: input, shape index: {}]   ;;  %s3403_s5 = inlined_call_operand.vmem [shape: f32[2,1,1], index: 5, kind: output, shape index: {}]  }
   0x1 LB: > { %s2244_s19 = sadd.s32 4294967295, %s2497_s18   ;;  %p2248_p0 = scmp.ge.s32.totalorder %s2497_s18, 1  ;;  %s2497_s18 = sphi %s2542_s18, %s15_s18  }
   0x2   : > { %p187_p1 = scmp.lt.s32.totalorder %s2497_s18, 3 }
   0x4   : > { %p188_p2 = pnand %p2248_p0, %p187_p1 }
   0x5   : > { %p213_p3 = scmp.lt.s32.totalorder (!%p188_p2), %s2244_s19, 1  ;;  %v292_v0 = vlaneseq (!%p188_p2)  ;;  %v2499_v1 = vmov (!%p188_p2), 0   ;;  %v2500_v3 = vmov (!%p188_p2), 1983009808   ;;  %s2501_s20 = smov (!%p188_p2), 116   ;;  %vm278_vm0 = vcmask (!%p188_p2), 1040384  }
   0x6   : > { %191 = sbr.rel (%p188_p2) target bundleno = 1283 (0x503), region = 40  ;;  %v2551_v2 = vrot.slane (!%p188_p2), %v2499_v1, 7  ;;  %v290_v4 = vunpack.c.l.s4 (!%p188_p2), %v2500_v3  ;;  %s2502_s25 = smov (!%p188_p2), 8   ;;  %vm279_vm1 = vsmask.f32 (!%p188_p2), 256  ;;  %vm489_vm3 = vcmask (!%p188_p2), 64512  }
   0x7   : > { %v293_v5 = vshrl.u32 (!%p188_p2), %v292_v0, 7  ;;  %s2503_s26 = smov (!%p188_p2), 16   ;;  %s2504_s27 = smov (!%p188_p2), 120   ;;  %vm2799_vm2 = vmand (!%p188_p2), %vm278_vm0, %vm279_vm1  ;;  %vm498_vm4 = vcmask (!%p188_p2), 130048   ;;  %vm507_vm5 = vcmask (!%p188_p2), 195584   ;;  %vm516_vm6 = vcmask (!%p188_p2), 228352  }
   0x8   : > { %266 = vrot.lane.b32.xlu0 (!%p188_p2), %v2551_v2, %s2501_s20  ;;  %v291_v6 = vunpack.c.0.s8 (!%p188_p2), %v290_v4  ;;  %s2505_s28 = smov (!%p188_p2), 20   ;;  %s2506_s29 = smov (!%p188_p2), 24   ;;  %vm525_vm7 = vcmask (!%p188_p2), 261120   ;;  %vm534_vm8 = vcmask (!%p188_p2), 293888   ;;  %vm1493_vm9 = vcmask (!%p188_p2), 523264  }
   0x9   : > { %s2507_s30 = smov (!%p188_p2), 28   ;;  %vm2511_vm10 = vmmov (!%p188_p2), 0   ;;  %vm2195_vm11 = vcmask (!%p188_p2), 0  }
   0xa   : > { %v2572_v10 = vsub.s32 (!%p188_p2), %v291_v6, %v293_v5 }
   0xd   : > { %s3407_s19 = smov (!%p213_p3, %s2244_s19), 1 }
   0xe   : > { %s2312_s21 = sshll.u32 %s3407_s19, 5  ;;  %s220_s22 = scalar_lea.vmem %s3403_s5, %s3407_s19 }
   0xf   : > { %s2561_s24 = scalar_lea.vmem %s3398_s0, %s2312_s21 }
  0x10   : > { %v2564_v7 = vld [vmem:[%s2561_s24 + $0xe] sm:$0x3]  ;;  %v2567_v8 = vld [vmem:[%s2561_s24 + $0x6] sm:$0x3]  ;;  %v2570_v9 = vld [vmem:[%s2561_s24 + $0x16] sm:$0x3] }
  0x11   : > { %v253_v11 = vshrl.u32 %v2564_v7, 16  ;;  %v256_v12 = vshll.u32 %v2564_v7, 16  ;;  %v246_v13 = vshrl.u32 %v2567_v8, 16  ;;  %v249_v14 = vshll.u32 %v2567_v8, 16  ;;  %v2579_v15 = vld [vmem:[%s2561_s24] sm:$0x3] }
  0x12   : > { %v260_v16 = vshrl.u32 %v2570_v9, 16  ;;  %v263_v17 = vshll.u32 %v2570_v9, 16  ;;  %v2585_v18 = vrot.slane %v2579_v15, %v2572_v10  ;;  %v2588_v19 = vld [vmem:[%s2561_s24 + $0x8] sm:$0x3]  ;;  %v2591_v20 = vld [vmem:[%s2561_s24 + $0x10] sm:$0x3]  ;;  %v2675_v4 = vrot.slane %v2567_v8, %v2572_v10 }
  0x13   : > { %v255_v21 = vrot.slane %v253_v11, 7  ;;  %v248_v22 = vrot.slane %v246_v13, 7  ;;  %v2595_v23 = vrot.slane %v2588_v19, %v2572_v10  ;;  %v2599_v24 = vrot.slane %v2591_v20, %v2572_v10  ;;  %v2602_v25 = vld [vmem:[%s2561_s24 + $0x18] sm:$0x3]  ;;  %v2611_v30 = vld [vmem:[%s2561_s24 + $0x2] sm:$0x3] }
  0x14   : > { %v262_v26 = vrot.slane %v260_v16, 7  ;;  %v318_v27 = vshrl.u32 %v2585_v18, 16  ;;  %v321_v28 = vshll.u32 %v2585_v18, 16  ;;  %v2608_v29 = vrot.slane %v2602_v25, %v2572_v10  ;;  %v2615_v34 = vld [vmem:[%s2561_s24 + $0xa] sm:$0x3] }
  0x15   : > { %v258_v31 = vor.u32 %v256_v12, %v255_v21  ;;  %v251_v32 = vor.u32 %v249_v14, %v248_v22  ;;  %v325_v33 = vshrl.u32 %v2595_v23, 16  ;;  %v2618_v35 = vld [vmem:[%s2561_s24 + $0x12] sm:$0x3]  ;;  %v328_v37 = vshll.u32 %v2595_v23, 16  ;;  %v2639_v48 = vld [vmem:[%s2561_s24 + $0x1a] sm:$0x3] }
  0x16   : > { %v320_v36 = vrot.slane %v318_v27, 7  ;;  %v332_v38 = vshrl.u32 %v2599_v24, 16  ;;  %v335_v39 = vshll.u32 %v2599_v24, 16  ;;  %v265_v40 = vor.u32 %v263_v17, %v262_v26  ;;  %v2644_v51 = vld [vmem:[%s2561_s24 + $0x4] sm:$0x3] }
  0x17   : > { %270 = vrot.lane.b32.xlu1 %v258_v31, %s2501_s20  ;;  %268 = vrot.lane.b32.xlu0 %v251_v32, %s2501_s20  ;;  %v327_v41 = vrot.slane %v325_v33, 7  ;;  %v339_v42 = vshrl.u32 %v2608_v29, 16  ;;  %v2628_v43 = vrot.slane %v2611_v30, %v2572_v10  ;;  %v2632_v46 = vrot.slane %v2615_v34, %v2572_v10  ;;  %v2648_v56 = vld [vmem:[%s2561_s24 + $0xc] sm:$0x3]  ;;  %v2659_v61 = vld [vmem:[%s2561_s24 + $0x14] sm:$0x3] }
  0x18   : > { %v323_v44 = vor.u32 %v321_v28, %v320_v36  ;;  %v334_v45 = vrot.slane %v332_v38, 7  ;;  %v2636_v47 = vrot.slane %v2618_v35, %v2572_v10  ;;  %v342_v49 = vshll.u32 %v2608_v29, 16  ;;  %v2666_v63 = vld [vmem:[%s2561_s24 + $0x1c] sm:$0x3] }
  0x19   : > { %v394_v50 = vshrl.u32 %v2628_v43, 16  ;;  %v330_v52 = vor.u32 %v328_v37, %v327_v41  ;;  %v341_v54 = vrot.slane %v339_v42, 7  ;;  %v397_v55 = vshll.u32 %v2628_v43, 16 }
  0x1a   : > { %v337_v53 = vor.u32 %v335_v39, %v334_v45  ;;  %v401_v58 = vshrl.u32 %v2632_v46, 16  ;;  %v408_v59 = vshrl.u32 %v2636_v47, 16  ;;  %v2656_v60 = vrot.slane %v2639_v48, %v2572_v10  ;;  %v2698_v38 = vld.sshfl [vmem:[%s2561_s24 + $0x1e] sm:$0x3 pattern:$0x76325410] }
  0x1b   : > { %272 = vrot.lane.b32.xlu1 %v265_v40, %s2501_s20  ;;  %345 = vrot.lane.b32.xlu0 %v323_v44, %s2501_s20  ;;  %v396_v57 = vrot.slane %v394_v50, 7  ;;  %v2663_v62 = vrot.slane %v2644_v51, %v2572_v10  ;;  %v404_v0 = vshll.u32 %v2632_v46, 16  ;;  %v2671_v3 = vrot.slane %v2648_v56, %v2572_v10  ;;  %s2508_s24 = smov 32  }
  0x1c   : > { %v344_v5 = vor.u32 %v342_v49, %v341_v54  ;;  %v415_v6 = vshrl.u32 %v2656_v60, 16  ;;  %v2681_v12 = vrot.slane %v2659_v61, %v2572_v10  ;;  %v403_v14 = vrot.slane %v401_v58, 7 }
  0x1d   : > { %v664_v11 = vshrl.u32 %v2663_v62, 16  ;;  %v399_v13 = vor.u32 %v397_v55, %v396_v57  ;;  %v410_v16 = vrot.slane %v408_v59, 7  ;;  %v411_v17 = vshll.u32 %v2636_v47, 16 }
  0x1e   : > { %v2688_v21 = vrot.slane %v2666_v63, %v2572_v10  ;;  %v418_v22 = vshll.u32 %v2656_v60, 16  ;;  %v671_v26 = vshrl.u32 %v2671_v3, 16  ;;  %v417_v27 = vrot.slane %v415_v6, 7 }
  0x1f   : > { %347 = vrot.lane.b32.xlu1 %v330_v52, %s2501_s20  ;;  %349 = vrot.lane.b32.xlu0 %v337_v53, %s2501_s20  ;;  %v666_v28 = vrot.slane %v664_v11, 7  ;;  %v667_v31 = vshll.u32 %v2663_v62, 16  ;;  %v678_v32 = vshrl.u32 %v2681_v12, 16  ;;  %v406_v33 = vor.u32 %v404_v0, %v403_v14 }
  0x20   : > { %v413_v36 = vor.u32 %v411_v17, %v410_v16  ;;  %v737_v37 = vshrl.u32 %v2675_v4, 16  ;;  %v685_v39 = vshrl.u32 %v2688_v21, 16  ;;  %v673_v40 = vrot.slane %v671_v26, 7 }
  0x21   : > { %v674_v41 = vshll.u32 %v2671_v3, 16  ;;  %v681_v42 = vshll.u32 %v2681_v12, 16  ;;  %v420_v44 = vor.u32 %v418_v22, %v417_v27  ;;  %v669_v45 = vor.u32 %v667_v31, %v666_v28 }
  0x22   : > { %v680_v49 = vrot.slane %v678_v32, 7  ;;  %v740_v50 = vshll.u32 %v2675_v4, 16  ;;  %v688_v52 = vshll.u32 %v2688_v21, 16  ;;  %v739_v53 = vrot.slane %v737_v37, 7  ;;  %v2446_v37 = vld [vmem:[%s3399_s1 + $0x18] sm:$0xff]  }
  0x23   : > { %351 = vrot.lane.b32.xlu1 %v344_v5, %s2501_s20  ;;  %421 = vrot.lane.b32.xlu0 %v399_v13, %s2501_s20  ;;  %v2709_v54 = vrot.slane %v2564_v7, %v2572_v10  ;;  %v2713_v55 = vrot.slane %v2570_v9, %v2572_v10  ;;  %v687_v57 = vrot.slane %v685_v39, 7  ;;  %v758_v58 = vshrl.u32 %v2698_v38, 16 }
  0x24   : > { %v676_v59 = vor.u32 %v674_v41, %v673_v40  ;;  %v683_v0 = vor.u32 %v681_v42, %v680_v49  ;;  %v742_v16 = vor.u32 %v740_v50, %v739_v53  ;;  %v761_v31 = vshll.u32 %v2698_v38, 16  ;;  %v2447_v41 = vld [vmem:[%s3399_s1 + $0x20] sm:$0xff]   ;;  %v2448_v50 = vld [vmem:[%s3399_s1 + $0x28] sm:$0xff]  }
  0x25   : > { %v744_v5 = vshrl.u32 %v2709_v54, 16  ;;  %v751_v6 = vshrl.u32 %v2713_v55, 16  ;;  %v747_v11 = vshll.u32 %v2709_v54, 16  ;;  %v754_v13 = vshll.u32 %v2713_v55, 16 }
  0x26   : > { %v690_v14 = vor.u32 %v688_v52, %v687_v57  ;;  %v760_v28 = vrot.slane %v758_v58, 7 }
  0x27   : > { %423 = vrot.lane.b32.xlu1 %v406_v33, %s2501_s20  ;;  %425 = vrot.lane.b32.xlu0 %v413_v36, %s2501_s20  ;;  %v746_v17 = vrot.slane %v744_v5, 7  ;;  %v753_v22 = vrot.slane %v751_v6, 7  ;;  %v2445_v36 = vld [vmem:[%s3399_s1 + $0x10] sm:$0xff]  }
  0x28   : > { %v763_v32 = vor.u32 %v761_v31, %v760_v28 }
  0x29   : > { %v749_v26 = vor.u32 %v747_v11, %v746_v17  ;;  %v756_v27 = vor.u32 %v754_v13, %v753_v22  ;;  %v2450_v13 = vld [vmem:[%s3399_s1 + $0x38] sm:$0xff]  }
  0x2b   : > { %427 = vrot.lane.b32.xlu1 %v420_v44, %s2501_s20  ;;  %691 = vrot.lane.b32.xlu0 %v669_v45, %s2501_s20 }
  0x2f   : > { %693 = vrot.lane.b32.xlu1 %v676_v59, %s2501_s20  ;;  %695 = vrot.lane.b32.xlu0 %v683_v0, %s2501_s20  ;;  %v2449_v59 = vld [vmem:[%s3399_s1 + $0x30] sm:$0xff]  }
  0x33   : > { %697 = vrot.lane.b32.xlu1 %v690_v14, %s2501_s20  ;;  %764 = vrot.lane.b32.xlu0 %v742_v16, %s2501_s20 }
  0x37   : > { %766 = vrot.lane.b32.xlu1 %v749_v26, %s2501_s20  ;;  %768 = vrot.lane.b32.xlu0 %v756_v27, %s2501_s20 }
  0x3b   : > { %770 = vrot.lane.b32.xlu1 %v763_v32, %s2501_s20  ;;  %437 = vrot.lane.b32.xlu0 %v2585_v18, %s2502_s25 }
  0x3f   : > { %439 = vrot.lane.b32.xlu1 %v2595_v23, %s2502_s25  ;;  %441 = vrot.lane.b32.xlu0 %v2599_v24, %s2502_s25 }
  0x43   : > { %443 = vrot.lane.b32.xlu1 %v2608_v29, %s2502_s25  ;;  %445 = vrot.lane.b32.xlu0 %v2628_v43, %s2503_s26 }
  0x47   : > { %447 = vrot.lane.b32.xlu1 %v2632_v46, %s2503_s26  ;;  %449 = vrot.lane.b32.xlu0 %v2636_v47, %s2503_s26 }
  0x4b   : > { %451 = vrot.lane.b32.xlu1 %v2656_v60, %s2503_s26  ;;  %543 = vrot.lane.b32.xlu0 %v2499_v1, %s2504_s27 }
  0x4f   : > { %545 = vrot.lane.b32.xlu1 %v2567_v8, %s2504_s27  ;;  %547 = vrot.lane.b32.xlu0 %v2564_v7, %s2504_s27 }
  0x53   : > { %549 = vrot.lane.b32.xlu1 %v2570_v9, %s2504_s27  ;;  %551 = vrot.lane.b32.xlu0 %v2628_v43, %s2502_s25 }
  0x57   : > { %553 = vrot.lane.b32.xlu1 %v2632_v46, %s2502_s25  ;;  %555 = vrot.lane.b32.xlu0 %v2636_v47, %s2502_s25 }
  0x5b   : > { %557 = vrot.lane.b32.xlu1 %v2656_v60, %s2502_s25  ;;  %559 = vrot.lane.b32.xlu0 %v2499_v1, %s2505_s28 }
  0x5f   : > { %561 = vrot.lane.b32.xlu1 %v2567_v8, %s2505_s28  ;;  %563 = vrot.lane.b32.xlu0 %v2564_v7, %s2505_s28 }
  0x63   : > { %565 = vrot.lane.b32.xlu1 %v2570_v9, %s2505_s28  ;;  %567 = vrot.lane.b32.xlu0 %v2585_v18, %s2506_s29  ;;  %v2443_v18 = vld [vmem:[%s3399_s1] sm:$0xff]  }
  0x64   : > { %2378 = vmatprep.subr.bf16.mxu0 %v2443_v18 }
  0x65   : > { %2379 = vmatpush3.bf16.msra.mxu0 %v2443_v18 }
  0x67   : > { %569 = vrot.lane.b32.xlu1 %v2595_v23, %s2506_s29  ;;  %571 = vrot.lane.b32.xlu0 %v2599_v24, %s2506_s29  ;;  %v2444_v24 = vld [vmem:[%s3399_s1 + $0x8] sm:$0xff]  }
  0x68   : > { %2380 = vmatprep.subr.bf16.mxu0 %v2444_v24 }
  0x69   : > { %2381 = vmatpush3.bf16.msra.mxu0 %v2444_v24 }
  0x6a   : > { %2382 = vmatprep.subr.bf16.mxu0 %v2445_v36 }
  0x6b   : > { %573 = vrot.lane.b32.xlu1 %v2608_v29, %s2506_s29  ;;  %575 = vrot.lane.b32.xlu0 %v2628_v43, %s2507_s30 }
  0x6d   : > { %2383 = vmatpush3.bf16.msra.mxu0 %v2445_v36 }
  0x6e   : > { %2384 = vmatprep.subr.bf16.mxu0 %v2446_v37 }
  0x6f   : > { %577 = vrot.lane.b32.xlu1 %v2632_v46, %s2507_s30  ;;  %579 = vrot.lane.b32.xlu0 %v2636_v47, %s2507_s30 }
  0x71   : > { %2385 = vmatpush3.bf16.msra.mxu0 %v2446_v37 }
  0x72   : > { %2386 = vmatprep.subr.bf16.mxu0 %v2447_v41 }
  0x73   : > { %581 = vrot.lane.b32.xlu1 %v2656_v60, %s2507_s30  ;;  %780 = vrot.lane.b32.xlu0 %v2663_v62, %s2502_s25 }
  0x75   : > { %2387 = vmatpush3.bf16.msra.mxu0 %v2447_v41 }
  0x76   : > { %2388 = vmatprep.subr.bf16.mxu0 %v2448_v50 }
  0x77   : > { %782 = vrot.lane.b32.xlu1 %v2671_v3, %s2502_s25  ;;  %784 = vrot.lane.b32.xlu0 %v2681_v12, %s2502_s25 }
  0x79   : > { %2389 = vmatpush3.bf16.msra.mxu0 %v2448_v50 }
  0x7a   : > { %v267_v29 = vpop.permute.xlu0 %266  ;;  %2390 = vmatprep.subr.bf16.mxu0 %v2449_v59 }
  0x7b   : > { %786 = vrot.lane.b32.xlu1 %v2688_v21, %s2502_s25  ;;  %788 = vrot.lane.b32.xlu0 %v2675_v4, %s2503_s26  ;;  %v281_v33 = vsel %vm2799_vm2, 0, %v267_v29 }
  0x7d   : > { %2391 = vmatpush3.bf16.msra.mxu0 %v2449_v59 }
  0x7e   : > { %2392 = vmatprep.subr.bf16.mxu0 %v2450_v13 }
  0x7f   : > { %790 = vrot.lane.b32.xlu1 %v2709_v54, %s2503_s26  ;;  %457 = vrot.lane.b32.xlu0 %v281_v33, %s2506_s29 }
  0x81   : > { %2393 = vmatpush3.bf16.msra.mxu0 %v2450_v13 }
  0x89   : > { %v271_v39 = vpop.permute.xlu1 %270  ;;  %v269_v40 = vpop.permute.xlu0 %268 }
  0x8a   : > { %v282_v42 = vsel %vm2799_vm2, 0, %v269_v40  ;;  %v283_v44 = vsel %vm2799_vm2, 0, %v271_v39 }
  0x8b   : > { %459 = vrot.lane.b32.xlu1 %v282_v42, %s2506_s29  ;;  %461 = vrot.lane.b32.xlu0 %v283_v44, %s2506_s29 }
  0x8d   : > { %v273_v45 = vpop.permute.xlu1 %272  ;;  %v346_v49 = vpop.permute.xlu0 %345 }
  0x8e   : > { %v284_v52 = vsel %vm2799_vm2, 0, %v273_v45  ;;  %v357_v53 = vsel %vm2799_vm2, 0, %v346_v49 }
  0x8f   : > { %463 = vrot.lane.b32.xlu1 %v284_v52, %s2506_s29  ;;  %469 = vrot.lane.b32.xlu0 %v357_v53, %s2507_s30 }
  0x91   : > { %v348_v57 = vpop.permute.xlu1 %347  ;;  %v350_v58 = vpop.permute.xlu0 %349 }
  0x92   : > { %v358_v0 = vsel %vm2799_vm2, 0, %v348_v57  ;;  %v359_v5 = vsel %vm2799_vm2, 0, %v350_v58 }
  0x93   : > { %471 = vrot.lane.b32.xlu1 %v358_v0, %s2507_s30  ;;  %473 = vrot.lane.b32.xlu0 %v359_v5, %s2507_s30 }
  0x95   : > { %v352_v6 = vpop.permute.xlu1 %351  ;;  %v422_v11 = vpop.permute.xlu0 %421 }
  0x96   : > { %v360_v14 = vsel %vm2799_vm2, 0, %v352_v6  ;;  %v433_v16 = vsel %vm2799_vm2, 0, %v422_v11 }
  0x97   : > { %475 = vrot.lane.b32.xlu1 %v360_v14, %s2507_s30  ;;  %481 = vrot.lane.b32.xlu0 %v433_v16, %s2508_s24 }
  0x99   : > { %v424_v17 = vpop.permute.xlu1 %423  ;;  %v426_v22 = vpop.permute.xlu0 %425 }
  0x9a   : > { %v434_v26 = vsel %vm2799_vm2, 0, %v424_v17  ;;  %v435_v27 = vsel %vm2799_vm2, 0, %v426_v22 }
  0x9b   : > { %483 = vrot.lane.b32.xlu1 %v434_v26, %s2508_s24  ;;  %485 = vrot.lane.b32.xlu0 %v435_v27, %s2508_s24 }
  0x9d   : > { %v428_v28 = vpop.permute.xlu1 %427  ;;  %v692_v31 = vpop.permute.xlu0 %691 }
  0x9e   : > { %v436_v32 = vsel %vm2799_vm2, 0, %v428_v28 }
  0x9f   : > { %487 = vrot.lane.b32.xlu1 %v436_v32, %s2508_s24  ;;  %792 = vrot.lane.b32.xlu0 %v2713_v55, %s2503_s26 }
  0xa1   : > { %v694_v18 = vpop.permute.xlu1 %693  ;;  %v696_v24 = vpop.permute.xlu0 %695 }
  0xa2   : > { %v704_v13 = vsel %vm2799_vm2, 0, %v694_v18  ;;  %v705_v14 = vsel %vm2799_vm2, 0, %v696_v24 }
  0xa3   : > { %794 = vrot.lane.b32.xlu1 %v2698_v38, %s2503_s26  ;;  %876 = vrot.lane.b32.xlu0 %v2628_v43, %s2504_s27 }
  0xa5   : > { %v698_v29 = vpop.permute.xlu1 %697  ;;  %v765_v33 = vpop.permute.xlu0 %764 }
  0xa6   : > { %v706_v17 = vsel %vm2799_vm2, 0, %v698_v29 }
  0xa7   : > { %878 = vrot.lane.b32.xlu1 %v2632_v46, %s2504_s27  ;;  %880 = vrot.lane.b32.xlu0 %v2636_v47, %s2504_s27 }
  0xa9   : > { %v767_v36 = vpop.permute.xlu1 %766  ;;  %v769_v37 = vpop.permute.xlu0 %768 }
  0xaa   : > { %v777_v18 = vsel %vm2799_vm2, 0, %v767_v36 }
  0xab   : > { %882 = vrot.lane.b32.xlu1 %v2656_v60, %s2504_s27  ;;  %796 = vrot.lane.b32.xlu0 %v433_v16, %s2506_s29 }
  0xad   : > { %v771_v39 = vpop.permute.xlu1 %770  ;;  %v438_v40 = vpop.permute.xlu0 %437 }
  0xae   : > { %v491_v44 = vsel %vm489_vm3, 0, %v438_v40  ;;  %v779_v29 = vsel %vm2799_vm2, 0, %v771_v39 }
  0xaf   : > { %798 = vrot.lane.b32.xlu1 %v434_v26, %s2506_s29  ;;  %800 = vrot.lane.b32.xlu0 %v435_v27, %s2506_s29 }
  0xb1   : > { %v440_v41 = vpop.permute.xlu1 %439  ;;  %v442_v42 = vpop.permute.xlu0 %441 }
  0xb2   : > { %v493_v52 = vsel %vm489_vm3, %v2567_v8, %v440_v41  ;;  %v495_v53 = vsel %vm489_vm3, %v2564_v7, %v442_v42  ;;  %v703_v8 = vsel %vm2799_vm2, 0, %v692_v31  ;;  %v776_v31 = vsel %vm2799_vm2, 0, %v765_v33 }
  0xb3   : > { %802 = vrot.lane.b32.xlu1 %v436_v32, %s2506_s29  ;;  %884 = vrot.lane.b32.xlu0 %v2675_v4, %s2502_s25 }
  0xb5   : > { %v444_v45 = vpop.permute.xlu1 %443  ;;  %v446_v49 = vpop.permute.xlu0 %445 }
  0xb6   : > { %v2882_v50 = vsel %vm498_vm4, %v491_v44, %v446_v49  ;;  %v497_v7 = vsel %vm489_vm3, %v2570_v9, %v444_v45 }
  0xb7   : > { %886 = vrot.lane.b32.xlu1 %v2709_v54, %s2502_s25  ;;  %888 = vrot.lane.b32.xlu0 %v2713_v55, %s2502_s25 }
  0xb9   : > { %v448_v57 = vpop.permute.xlu1 %447  ;;  %v450_v58 = vpop.permute.xlu0 %449 }
  0xba   : > { %v2893_v59 = vsel %vm498_vm4, %v493_v52, %v448_v57  ;;  %v2896_v0 = vsel %vm498_vm4, %v495_v53, %v450_v58 }
  0xbb   : > { %890 = vrot.lane.b32.xlu1 %v2698_v38, %s2502_s25  ;;  %808 = vrot.lane.b32.xlu0 %v703_v8, %s2507_s30  ;;  %s2509_s25 = smov 64  }
  0xbd   : > { %v452_v5 = vpop.permute.xlu1 %451  ;;  %v544_v6 = vpop.permute.xlu0 %543 }
  0xbe   : > { %v2906_v11 = vsel %vm498_vm4, %v497_v7, %v452_v5  ;;  %v585_v40 = vsel %vm489_vm3, %v544_v6, %v2579_v15 }
  0xbf   : > { %810 = vrot.lane.b32.xlu1 %v704_v13, %s2507_s30  ;;  %812 = vrot.lane.b32.xlu0 %v705_v14, %s2507_s30 }
  0xc1   : > { %v546_v9 = vpop.permute.xlu1 %545  ;;  %v548_v16 = vpop.permute.xlu0 %547 }
  0xc2   : > { %v591_v41 = vsel %vm489_vm3, %v548_v16, %v2591_v20 }
  0xc3   : > { %814 = vrot.lane.b32.xlu1 %v706_v17, %s2507_s30  ;;  %892 = vrot.lane.b32.xlu0 %v2628_v43, %s2505_s28 }
  0xc5   : > { %v550_v22 = vpop.permute.xlu1 %549  ;;  %v552_v26 = vpop.permute.xlu0 %551 }
  0xc7   : > { %894 = vrot.lane.b32.xlu1 %v2632_v46, %s2505_s28  ;;  %896 = vrot.lane.b32.xlu0 %v2636_v47, %s2505_s28  ;;  %v778_v46 = vsel %vm2799_vm2, 0, %v769_v37 }
  0xc9   : > { %v554_v27 = vpop.permute.xlu1 %553  ;;  %v556_v28 = vpop.permute.xlu0 %555 }
  0xca   : > { %v600_v44 = vsel %vm498_vm4, %v591_v41, %v556_v28 }
  0xcb   : > { %898 = vrot.lane.b32.xlu1 %v2656_v60, %s2505_s28  ;;  %820 = vrot.lane.b32.xlu0 %v776_v31, %s2508_s24 }
  0xcd   : > { %v558_v32 = vpop.permute.xlu1 %557  ;;  %v560_v43 = vpop.permute.xlu0 %559 }
  0xcf   : > { %822 = vrot.lane.b32.xlu1 %v777_v18, %s2508_s24  ;;  %824 = vrot.lane.b32.xlu0 %v778_v46, %s2508_s24 }
  0xd1   : > { %v562_v47 = vpop.permute.xlu1 %561  ;;  %v564_v24 = vpop.permute.xlu0 %563 }
  0xd2   : > { %v608_v53 = vsel %vm507_vm5, %v600_v44, %v564_v24 }
  0xd3   : > { %826 = vrot.lane.b32.xlu1 %v779_v29, %s2508_s24  ;;  %900 = vrot.lane.b32.xlu0 %v2663_v62, %s2506_s29  ;;  %v588_v62 = vsel %vm489_vm3, %v546_v9, %v2588_v19  ;;  %v594_v19 = vsel %vm489_vm3, %v550_v22, %v2602_v25 }
  0xd4   : > { %v598_v42 = vsel %vm498_vm4, %v588_v62, %v554_v27 }
  0xd5   : > { %v566_v60 = vpop.permute.xlu1 %565  ;;  %v568_v33 = vpop.permute.xlu0 %567 }
  0xd7   : > { %902 = vrot.lane.b32.xlu1 %v2671_v3, %s2506_s29  ;;  %904 = vrot.lane.b32.xlu0 %v2681_v12, %s2506_s29  ;;  %v596_v3 = vsel %vm498_vm4, %v585_v40, %v552_v26 }
  0xd8   : > { %v604_v15 = vsel %vm507_vm5, %v596_v3, %v560_v43 }
  0xd9   : > { %v570_v36 = vpop.permute.xlu1 %569  ;;  %v572_v37 = vpop.permute.xlu0 %571 }
  0xda   : > { %v616_v57 = vsel %vm516_vm6, %v608_v53, %v572_v37 }
  0xdb   : > { %906 = vrot.lane.b32.xlu1 %v2688_v21, %s2506_s29  ;;  %908 = vrot.lane.b32.xlu0 %v2675_v4, %s2507_s30  ;;  %v612_v21 = vsel %vm516_vm6, %v604_v15, %v568_v33  ;;  %v606_v4 = vsel %vm507_vm5, %v598_v42, %v562_v47 }
  0xdc   : > { %v614_v45 = vsel %vm516_vm6, %v606_v4, %v570_v36 }
  0xdd   : > { %v574_v39 = vpop.permute.xlu1 %573  ;;  %v576_v12 = vpop.permute.xlu0 %575 }
  0xde   : > { %v620_v20 = vsel %vm525_vm7, %v612_v21, %v576_v12 }
  0xdf   : > { %910 = vrot.lane.b32.xlu1 %v2709_v54, %s2507_s30  ;;  %912 = vrot.lane.b32.xlu0 %v2713_v55, %s2507_s30  ;;  %v602_v55 = vsel %vm498_vm4, %v594_v19, %v558_v32  ;;  %v627_v25 = vsel %vm534_vm8, %v620_v20, 0 }
  0xe0   : > { %v610_v8 = vsel %vm507_vm5, %v602_v55, %v566_v60 }
  0xe1   : > { %v578_v49 = vpop.permute.xlu1 %577  ;;  %v580_v52 = vpop.permute.xlu0 %579  ;;  %v618_v6 = vsel %vm516_vm6, %v610_v8, %v574_v39 }
  0xe2   : > { %v622_v54 = vsel %vm525_vm7, %v614_v45, %v578_v49  ;;  %v624_v5 = vsel %vm525_vm7, %v616_v57, %v580_v52 }
  0xe3   : > { %v628_v58 = vsel %vm534_vm8, %v622_v54, 0  ;;  %914 = vrot.lane.b32.xlu1 %v2698_v38, %s2507_s30  ;;  %v629_v16 = vsel %vm534_vm8, %v624_v5, 0  ;;  %1429 = vrot.lane.b32.xlu0 %v2499_v1, %s2509_s25 }
  0xe4   : > { %v990_v7 = vcombine.low %v627_v25, %v628_v58 }
  0xe5   : > { %v582_v13 = vpop.permute.xlu1 %581  ;;  %v781_v14 = vpop.permute.xlu0 %780 }
  0xe6   : > { %v626_v9 = vsel %vm525_vm7, %v618_v6, %v582_v13  ;;  %v998_v38 = vrot.slane %v990_v7, %v2572_v10  ;;  %v830_v31 = vsel %vm489_vm3, %v2611_v30, %v781_v14 }
  0xe7   : > { %v630_v17 = vsel %vm534_vm8, %v626_v9, 0 }
  0xe8   : > { %v991_v22 = vcombine.low %v629_v16, %v630_v17 }
  0xe9   : > { %v783_v26 = vpop.permute.xlu1 %782  ;;  %v2981_v27 = vpop.permute.xlu0 %784 }
  0xea   : > { %v1005_v28 = vrot.slane %v991_v22, %v2572_v10  ;;  %v833_v47 = vsel %vm489_vm3, %v2615_v34, %v783_v26 }
  0xec   : > { %v1006_v32 = vcombine.low %v998_v38, %v1005_v28 }
  0xed   : > { %v2987_v43 = vpop.permute.xlu1 %786  ;;  %v789_v18 = vpop.permute.xlu0 %788 }
  0xee   : > { %v2990_v46 = vsel %vm498_vm4, %v830_v31, %v789_v18 }
  0xf1   : > { %v791_v24 = vpop.permute.xlu1 %790  ;;  %v458_v60 = vpop.permute.xlu0 %457 }
  0xf2   : > { %v2995_v29 = vsel %vm498_vm4, %v833_v47, %v791_v24  ;;  %v509_v12 = vsel %vm507_vm5, %v2882_v50, %v458_v60 }
  0xfd   : > { %v460_v33 = vpop.permute.xlu1 %459  ;;  %v462_v36 = vpop.permute.xlu0 %461 }
  0xfe   : > { %v511_v34 = vsel %vm507_vm5, %v2893_v59, %v460_v33  ;;  %v513_v4 = vsel %vm507_vm5, %v2896_v0, %v462_v36 }
 0x101   : > { %v464_v37 = vpop.permute.xlu1 %463  ;;  %v470_v40 = vpop.permute.xlu0 %469 }
 0x102   : > { %v518_v41 = vsel %vm516_vm6, %v509_v12, %v470_v40  ;;  %v515_v59 = vsel %vm507_vm5, %v2906_v11, %v464_v37 }
 0x105   : > { %v472_v30 = vpop.permute.xlu1 %471  ;;  %v474_v62 = vpop.permute.xlu0 %473 }
 0x106   : > { %v520_v42 = vsel %vm516_vm6, %v511_v34, %v472_v30  ;;  %v522_v44 = vsel %vm516_vm6, %v513_v4, %v474_v62 }
 0x109   : > { %v476_v3 = vpop.permute.xlu1 %475  ;;  %v482_v39 = vpop.permute.xlu0 %481 }
 0x10a   : > { %v527_v15 = vsel %vm525_vm7, %v518_v41, %v482_v39  ;;  %v524_v53 = vsel %vm516_vm6, %v515_v59, %v476_v3  ;;  %v836_v39 = vsel %vm489_vm3, %v2618_v35, %v2981_v27 }
 0x10b   : > { %v535_v50 = vsel %vm534_vm8, %v527_v15, 0 }
 0x10d   : > { %v484_v21 = vpop.permute.xlu1 %483  ;;  %v486_v19 = vpop.permute.xlu0 %485 }
 0x10e   : > { %v529_v20 = vsel %vm525_vm7, %v520_v42, %v484_v21  ;;  %v531_v52 = vsel %vm525_vm7, %v522_v44, %v486_v19 }
 0x10f   : > { %v536_v45 = vsel %vm534_vm8, %v529_v20, 0  ;;  %v537_v57 = vsel %vm534_vm8, %v531_v52, 0 }
 0x110   : > { %v968_v49 = vcombine.low %v535_v50, %v536_v45 }
 0x111   : > { %v488_v54 = vpop.permute.xlu1 %487  ;;  %v793_v55 = vpop.permute.xlu0 %792 }
 0x112   : > { %v533_v0 = vsel %vm525_vm7, %v524_v53, %v488_v54  ;;  %v976_v5 = vrot.slane %v968_v49, %v2572_v10  ;;  %v845_v34 = vsel %vm498_vm4, %v836_v39, %v793_v55 }
 0x113   : > { %v538_v25 = vsel %vm534_vm8, %v533_v0, 0 }
 0x114   : > { %v969_v58 = vcombine.low %v537_v57, %v538_v25 }
 0x115   : > { %v795_v8 = vpop.permute.xlu1 %794  ;;  %v877_v7 = vpop.permute.xlu0 %876 }
 0x116   : > { %v983_v11 = vrot.slane %v969_v58, %v2572_v10 }
 0x118   : > { %v984_v6 = vcombine.low %v976_v5, %v983_v11  ;;  %v918_v11 = vsel %vm489_vm3, %v877_v7, %v2644_v51 }
 0x119   : > { %v879_v13 = vpop.permute.xlu1 %878  ;;  %v881_v14 = vpop.permute.xlu0 %880 }
 0x11a   : > { %2394 = vmatprep.mubr.bf16.mxu0 %v984_v6  ;;  %v921_v6 = vsel %vm489_vm3, %v879_v13, %v2648_v56 }
 0x11b   : > { %2395 = vmatmul.mubr.bf16.vlgmr.msra.gmra.mrb[0].mxu0 %v1006_v32 }
 0x11d   : > { %v3019_v9 = vpop.permute.xlu1 %882  ;;  %v797_v16 = vpop.permute.xlu0 %796 }
 0x11e   : > { %v849_v32 = vsel %vm507_vm5, %v2990_v46, %v797_v16  ;;  %v839_v46 = vsel %vm489_vm3, %v2639_v48, %v2987_v43  ;;  %v927_v13 = vsel %vm489_vm3, %v3019_v9, %v2666_v63 }
 0x11f   : > { %v847_v35 = vsel %vm498_vm4, %v839_v46, %v795_v8 }
 0x121   : > { %v799_v17 = vpop.permute.xlu1 %798  ;;  %v801_v22 = vpop.permute.xlu0 %800 }
 0x122   : > { %v851_v12 = vsel %vm507_vm5, %v2995_v29, %v799_v17  ;;  %v853_v19 = vsel %vm507_vm5, %v845_v34, %v801_v22  ;;  %v924_v22 = vsel %vm489_vm3, %v881_v14, %v2659_v61  ;;  %v2252_v34 = vld [vmem:[%s3400_s2] ss:$0 sm:$0xff] }
 0x125   : > { %v803_v26 = vpop.permute.xlu1 %802  ;;  %v885_v38 = vpop.permute.xlu0 %884 }
 0x126   : > { %v855_v44 = vsel %vm507_vm5, %v847_v35, %v803_v26  ;;  %v929_v16 = vsel %vm498_vm4, %v918_v11, %v885_v38  ;;  %v2456_v11 = vld [vmem:[%s3401_s3 + $0x10] sm:$0xff]  }
 0x129   : > { %v887_v28 = vpop.permute.xlu1 %886  ;;  %v889_v31 = vpop.permute.xlu0 %888 }
 0x12a   : > { %v931_v17 = vsel %vm498_vm4, %v921_v6, %v887_v28 }
 0x12d   : > { %v891_v18 = vpop.permute.xlu1 %890  ;;  %v809_v47 = vpop.permute.xlu0 %808 }
 0x12e   : > { %v857_v3 = vsel %vm516_vm6, %v849_v32, %v809_v47  ;;  %v935_v28 = vsel %vm498_vm4, %v927_v13, %v891_v18 }
 0x131   : > { %v811_v24 = vpop.permute.xlu1 %810  ;;  %v813_v60 = vpop.permute.xlu0 %812 }
 0x132   : > { %v859_v15 = vsel %vm516_vm6, %v851_v12, %v811_v24  ;;  %v861_v27 = vsel %vm516_vm6, %v853_v19, %v813_v60  ;;  %v933_v24 = vsel %vm498_vm4, %v924_v22, %v889_v31 }
 0x135   : > { %v815_v33 = vpop.permute.xlu1 %814  ;;  %v893_v36 = vpop.permute.xlu0 %892 }
 0x136   : > { %v863_v59 = vsel %vm516_vm6, %v855_v44, %v815_v33  ;;  %v937_v26 = vsel %vm507_vm5, %v929_v16, %v893_v36 }
 0x139   : > { %v895_v37 = vpop.permute.xlu1 %894  ;;  %v897_v40 = vpop.permute.xlu0 %896 }
 0x13a   : > { %v939_v47 = vsel %vm507_vm5, %v931_v17, %v895_v37  ;;  %v941_v38 = vsel %vm507_vm5, %v933_v24, %v897_v40 }
 0x13d   : > { %v899_v30 = vpop.permute.xlu1 %898  ;;  %v821_v62 = vpop.permute.xlu0 %820 }
 0x13e   : > { %v865_v41 = vsel %vm525_vm7, %v857_v3, %v821_v62  ;;  %v943_v36 = vsel %vm507_vm5, %v935_v28, %v899_v30 }
 0x13f   : > { %v872_v29 = vsel %vm534_vm8, %v865_v41, 0 }
 0x141   : > { %v823_v42 = vpop.permute.xlu1 %822  ;;  %v825_v21 = vpop.permute.xlu0 %824 }
 0x142   : > { %v867_v4 = vsel %vm525_vm7, %v859_v15, %v823_v42  ;;  %v869_v45 = vsel %vm525_vm7, %v861_v27, %v825_v21 }
 0x143   : > { %v873_v20 = vsel %vm534_vm8, %v867_v4, 0  ;;  %v874_v52 = vsel %vm534_vm8, %v869_v45, 0 }
 0x144   : > { %v1012_v50 = vcombine.low %v872_v29, %v873_v20 }
 0x145   : > { %v827_v48 = vpop.permute.xlu1 %826  ;;  %v901_v43 = vpop.permute.xlu0 %900 }
 0x146   : > { %v871_v49 = vsel %vm525_vm7, %v863_v59, %v827_v48  ;;  %v1020_v57 = vrot.slane %v1012_v50, %v2572_v10  ;;  %v945_v60 = vsel %vm516_vm6, %v937_v26, %v901_v43  ;;  %v2451_v48 = vld [vmem:[%s3401_s3 + $0x40] sm:$0xff]  }
 0x147   : > { %v875_v53 = vsel %vm534_vm8, %v871_v49, 0  ;;  %v2452_v43 = vld [vmem:[%s3401_s3] sm:$0xff]   ;;  %v2453_v49 = vld [vmem:[%s3401_s3 + $0x48] sm:$0xff]   ;;  %2325 = vmatprep.subr.bf16.mxu1 %v2451_v48 }
 0x148   : > { %v1013_v54 = vcombine.low %v874_v52, %v875_v53  ;;  %2326 = vmatpush3.bf16.msra.mxu1 %v2452_v43 }
 0x149   : > { %v903_v55 = vpop.permute.xlu1 %902  ;;  %v905_v0 = vpop.permute.xlu0 %904  ;;  %2327 = vmatprep.subr.bf16.mxu1 %v2453_v49  ;;  %v2468_v49 = vld [vmem:[%s3401_s3 + $0x30] sm:$0xff]  }
 0x14a   : > { %v1027_v25 = vrot.slane %v1013_v54, %v2572_v10  ;;  %v947_v51 = vsel %vm516_vm6, %v939_v47, %v903_v55  ;;  %v949_v31 = vsel %vm516_vm6, %v941_v38, %v905_v0  ;;  %v2454_v54 = vld [vmem:[%s3401_s3 + $0x8] sm:$0xff]   ;;  %v2455_v55 = vld [vmem:[%s3401_s3 + $0x50] sm:$0xff]   ;;  %v2457_v47 = vld [vmem:[%s3401_s3 + $0x58] sm:$0xff]  }
 0x14b   : > { %v2458_v38 = vld [vmem:[%s3401_s3 + $0x18] sm:$0xff]  }
 0x14c   : > { %v1028_v58 = vcombine.low %v1020_v57, %v1027_v25  ;;  %2328 = vmatpush3.bf16.msra.mxu1 %v2454_v54 }
 0x14d   : > { %v907_v8 = vpop.permute.xlu1 %906  ;;  %v909_v5 = vpop.permute.xlu0 %908  ;;  %2329 = vmatprep.subr.bf16.mxu1 %v2455_v55  ;;  %v2470_v55 = vld [vmem:[%s3401_s3 + $0x90] sm:$0xff]  }
 0x14e   : > { %2398 = vmatprep.mubr.bf16.mxu0 %v1028_v58  ;;  %v953_v61 = vsel %vm525_vm7, %v945_v60, %v909_v5  ;;  %v951_v62 = vsel %vm516_vm6, %v943_v36, %v907_v8 }
 0x14f   : > { %v960_v63 = vsel %vm534_vm8, %v953_v61, 0 }
 0x150   : > { %2330 = vmatpush3.bf16.msra.mxu1 %v2456_v11  ;;  %v2472_v11 = vld [vmem:[%s3401_s3 + $0x38] sm:$0xff]  }
 0x151   : > { %v911_v7 = vpop.permute.xlu1 %910  ;;  %v913_v56 = vpop.permute.xlu0 %912  ;;  %2331 = vmatprep.subr.bf16.mxu1 %v2457_v47 }
 0x152   : > { %v955_v14 = vsel %vm525_vm7, %v947_v51, %v911_v7  ;;  %v957_v37 = vsel %vm525_vm7, %v949_v31, %v913_v56 }
 0x153   : > { %v961_v33 = vsel %vm534_vm8, %v955_v14, 0  ;;  %v962_v3 = vsel %vm534_vm8, %v957_v37, 0 }
 0x154   : > { %v1034_v40 = vcombine.low %v960_v63, %v961_v33  ;;  %2332 = vmatpush3.bf16.msra.mxu1 %v2458_v38 }
 0x155   : > { %v915_v9 = vpop.permute.xlu1 %914 }
 0x156   : > { %v959_v32 = vsel %vm525_vm7, %v951_v62, %v915_v9  ;;  %v1042_v12 = vrot.slane %v1034_v40, %v2572_v10  ;;  %v2459_v9 = vld [vmem:[%s3401_s3 + $0x60] sm:$0xff]  }
 0x157   : > { %v963_v18 = vsel %vm534_vm8, %v959_v32, 0  ;;  %2333 = vmatprep.subr.bf16.mxu1 %v2459_v9 }
 0x158   : > { %v1035_v39 = vcombine.low %v962_v3, %v963_v18  ;;  %v2460_v3 = vld [vmem:[%s3401_s3 + $0x20] sm:$0xff]  }
 0x159   : > { %v2461_v18 = vld [vmem:[%s3401_s3 + $0xc0] sm:$0xff]   ;;  %2334 = vmatpush3.bf16.msra.mxu1 %v2460_v3  ;;  %v2483_v3 = vld [vmem:[%s3401_s3 + $0xb0] sm:$0xff]  }
 0x15a   : > { %v1049_v41 = vrot.slane %v1035_v39, %v2572_v10  ;;  %2347 = vmatprep.subr.bf16.mxu0 %v2461_v18  ;;  %v2484_v18 = vld [vmem:[%s3401_s3 + $0xf8] sm:$0xff]  }
 0x15c   : > { %v1050_v30 = vcombine.low %v1042_v12, %v1049_v41  ;;  %v2462_v12 = vld [vmem:[%s3401_s3 + $0x80] sm:$0xff]  }
 0x15d   : > { %2348 = vmatpush3.bf16.msra.mxu0 %v2462_v12  ;;  %v2486_v12 = vld [vmem:[%s3401_s3 + $0xb8] sm:$0xff]  }
 0x15e   : > { %2399 = vmatmul.mubr.bf16.gmra.mrb[4].mxu0 %v1050_v30 }
 0x1ee   : > { %v2396_v15 = vpop.f32.mrb[0].mxu0 }
 0x1ef   : > { %v1166_v42 = vadd.f32 %v2396_v15, %v2252_v34  ;;  %v1157_v21 = vpop.f32.mrb[1].mxu0 }
 0x1f0   : > { %v1158_v46 = vadd.f32 %v2252_v34, %v1157_v21  ;;  %v2397_v19 = vpop.f32.mrb[2].mxu0 }
 0x1f1   : > { %v1169_v4 = vadd.f32 %v2397_v19, %v2252_v34  ;;  %v1160_v35 = vpop.f32.mrb[3].mxu0  ;;  %v1190_v29 = vmax.f32 %v1166_v42, 0.0 }
 0x1f2   : > { %v1161_v27 = vadd.f32 %v2252_v34, %v1160_v35  ;;  %v1188_v44 = vmax.f32 %v1158_v46, 0.0  ;;  %v2464_v35 = vld [vmem:[%s3401_s3 + $0x28] sm:$0xff]  }
 0x1f3   : > { %v1191_v20 = vmax.f32 %v1169_v4, 0.0 }
 0x1f4   : > { %v3085_v50 = vmax.f32 %v1161_v27, 0.0  ;;  %v2465_v27 = vld [vmem:[%s3401_s3 + $0xc8] sm:$0xff]  }
 0x1f5   : > { %v1197_v45 = vpack.c.bf16 %v1191_v20, %v1190_v29  ;;  %v2262_v8 = vpack.c.bf16 %v1191_v20, %v1191_v20  ;;  %2349 = vmatprep.subr.bf16.mxu0 %v2465_v27 }
 0x1f6   : > { %v3088_v1 = vpack.c.bf16 %v3085_v50, %v1188_v44  ;;  %v2466_v44 = vld [vmem:[%s3401_s3 + $0x88] sm:$0xff]  }
 0x1f7   : > { %v1226_v59 = vrot.slane %v1197_v45, %v2572_v10  ;;  %v1233_v5 = vrot.slane %v2262_v8, %v2572_v10  ;;  %2350 = vmatpush3.bf16.msra.mxu0 %v2466_v44 }
 0x1f9   : > { %v3101_v52 = vrot.slane %v1226_v59, %v2572_v10  ;;  %v1234_v6 = vcombine.high %v1226_v59, %v1226_v59  ;;  %v3119_v17 = vrot.slane %v1233_v5, %v2572_v10  ;;  %v1235_v51 = vcombine.high %v1233_v5, %v1233_v5  ;;  %v2467_v59 = vld [vmem:[%s3401_s3 + $0x70] sm:$0xff]   ;;  %v2471_v5 = vld [vmem:[%s3401_s3 + $0x78] sm:$0xff]  }
 0x1fb   : > { %v1330_v53 = vshrl.u32 %v3101_v52, 16  ;;  %v1333_v57 = vshll.u32 %v3101_v52, 16  ;;  %v3125_v7 = vrot.slane %v1234_v6, %v2572_v10  ;;  %v1344_v31 = vshrl.u32 %v3119_v17, 16  ;;  %v2473_v6 = vld [vmem:[%s3401_s3 + $0xd8] sm:$0xff]  }
 0x1fc   : > { %v3132_v37 = vrot.slane %v1235_v51, %v2572_v10  ;;  %v1347_v15 = vshll.u32 %v3119_v17, 16 }
 0x1fd   : > { %v1332_v0 = vrot.slane %v1330_v53, 7  ;;  %v1337_v63 = vshrl.u32 %v3125_v7, 16  ;;  %v1346_v39 = vrot.slane %v1344_v31, 7  ;;  %v1340_v20 = vshll.u32 %v3125_v7, 16  ;;  %v2469_v53 = vld [vmem:[%s3401_s3 + $0xd0] sm:$0xff]   ;;  %v2477_v31 = vld [vmem:[%s3401_s3 + $0xa0] sm:$0xff]  }
 0x1fe   : > { %v1351_v21 = vshrl.u32 %v3132_v37, 16  ;;  %2351 = vmatprep.subr.bf16.mxu0 %v2469_v53 }
 0x1ff   : > { %v1335_v25 = vor.u32 %v1333_v57, %v1332_v0  ;;  %v1339_v42 = vrot.slane %v1337_v63, 7  ;;  %v1349_v29 = vor.u32 %v1347_v15, %v1346_v39  ;;  %2352 = vmatpush3.bf16.msra.mxu0 %v2470_v55 }
 0x200   : > { %v1353_v43 = vrot.slane %v1351_v21, 7  ;;  %2353 = vmatprep.subr.bf16.mxu0 %v2473_v6 }
 0x201   : > { %v1361_v58 = vsel %vm2799_vm2, 0, %v1335_v25  ;;  %v1342_v48 = vor.u32 %v1340_v20, %v1339_v42  ;;  %v1363_v57 = vsel %vm2799_vm2, 0, %v1349_v29  ;;  %v1354_v25 = vshll.u32 %v3132_v37, 16 }
 0x202   : > { %1441 = vrot.lane.b32.xlu0 %v1361_v58, %s2509_s25 }
 0x203   : > { %v1362_v58 = vsel %vm2799_vm2, 0, %v1342_v48  ;;  %v1356_v8 = vor.u32 %v1354_v25, %v1353_v43 }
 0x231   : > { %v2400_v16 = vpop.f32.mrb[4].mxu0 }
 0x232   : > { %v1182_v22 = vadd.f32 %v2400_v16, %v2252_v34  ;;  %v1173_v26 = vpop.f32.mrb[5].mxu0  ;;  %v2474_v16 = vld [vmem:[%s3401_s3 + $0x98] sm:$0xff]  }
 0x233   : > { %v1174_v24 = vadd.f32 %v2252_v34, %v1173_v26  ;;  %v2401_v60 = vpop.f32.mrb[6].mxu0  ;;  %2354 = vmatpush3.bf16.msra.mxu0 %v2474_v16 }
 0x234   : > { %v1185_v56 = vadd.f32 %v2401_v60, %v2252_v34  ;;  %v1176_v13 = vpop.f32.mrb[7].mxu0  ;;  %v1194_v14 = vmax.f32 %v1182_v22, 0.0 }
 0x235   : > { %v1177_v61 = vadd.f32 %v2252_v34, %v1176_v13  ;;  %v1192_v33 = vmax.f32 %v1174_v24, 0.0  ;;  %v2463_v34 = vld [vmem:[%s3401_s3 + $0x68] sm:$0xff]  }
 0x236   : > { %v1195_v28 = vmax.f32 %v1185_v56, 0.0  ;;  %2335 = vmatprep.subr.bf16.mxu1 %v2463_v34  ;;  %v1364_v56 = vsel %vm2799_vm2, 0, %v1356_v8 }
 0x237   : > { %v1193_v36 = vmax.f32 %v1177_v61, 0.0  ;;  %2336 = vmatpush3.bf16.msra.mxu1 %v2464_v35  ;;  %v1297_v35 = vsel %vm2799_vm2, 0, %v2551_v2 }
 0x238   : > { %v1199_v62 = vpack.c.bf16 %v1195_v28, %v1194_v14  ;;  %v2264_v40 = vpack.c.bf16 %v1195_v28, %v1195_v28  ;;  %2337 = vmatprep.subr.bf16.mxu1 %v2467_v59  ;;  %v2510_v14 = vmov 0.0  }
 0x239   : > { %v1198_v32 = vpack.c.bf16 %v1193_v36, %v1192_v33  ;;  %v2263_v41 = vpack.c.bf16 %v1193_v36, %v1193_v36 }
 0x23a   : > { %v3156_v46 = vrot.slane %v1199_v62, %v2572_v10  ;;  %v3159_v19 = vrot.slane %v2264_v40, %v2572_v10  ;;  %v2481_v40 = vld [vmem:[%s3401_s3 + $0xf0] sm:$0xff]  }
 0x23b   : > { %v3148_v30 = vrot.slane %v1198_v32, %v2572_v10  ;;  %v3178_v45 = vrot.slane %v2263_v41, %v2572_v10  ;;  %2338 = vmatpush3.bf16.msra.mxu1 %v2468_v49  ;;  %v1430_v41 = vpop.permute.xlu0 %1429 }
 0x23c   : > { %v3195_v54 = vcombine.high %v3156_v46, %v3156_v46  ;;  %v3202_v0 = vcombine.high %v3159_v19, %v3159_v19  ;;  %v1538_v26 = vsel %vm1493_vm9, %v3156_v46, 0  ;;  %2339 = vmatprep.subr.bf16.mxu1 %v2471_v5  ;;  %v1540_v24 = vsel %vm1493_vm9, %v3159_v19, 0 }
 0x23d   : > { %1431 = vrot.lane.b32.xlu1 %v3148_v30, %s2509_s25  ;;  %v3165_v4 = vcombine.high %v3148_v30, %v3148_v30  ;;  %v1586_v60 = vrot.slane %v1538_v26, %v2572_v10  ;;  %v1634_v13 = vrot.slane %v1540_v24, %v2572_v10  ;;  %v1463_v62 = vrot.slane %v3148_v30, %v2572_v10 }
 0x23e   : > { %v1542_v22 = vsel %vm1493_vm9, %v3202_v0, 0  ;;  %v1539_v47 = vsel %vm1493_vm9, %v3195_v54, 0  ;;  %v1477_v9 = vrot.slane %v3178_v45, %v2572_v10  ;;  %v1273_v30 = vshrl.u32 %v3156_v46, 16 }
 0x23f   : > { %1433 = vrot.lane.b32.xlu0 %v3165_v4, %s2509_s25  ;;  %2340 = vmatpush3.bf16.msra.mxu1 %v2472_v11  ;;  %v1610_v51 = vrot.slane %v1539_v47, %v2572_v10  ;;  %v1658_v38 = vrot.slane %v1542_v22, %v2572_v10  ;;  %v1470_v32 = vrot.slane %v3165_v4, %v2572_v10  ;;  %v1280_v15 = vshrl.u32 %v3195_v54, 16 }
 0x240   : > { %2402 = vmatprep.subr.bf16.mxu1 %v2510_v14  ;;  %v1287_v42 = vshrl.u32 %v3159_v19, 16  ;;  %v1275_v21 = vrot.slane %v1273_v30, 7  ;;  %v1276_v27 = vshll.u32 %v3156_v46, 16  ;;  %v1371_v44 = vrot.slane %v3156_v46, %v2572_v10 }
 0x241   : > { %1435 = vrot.lane.b32.xlu1 %v3178_v45, %s2509_s25  ;;  %v1782_v61 = vcombine.low %v1586_v60, %v1610_v51  ;;  %v1783_v28 = vcombine.low %v1634_v13, %v1658_v38  ;;  %v1282_v29 = vrot.slane %v1280_v15, 7  ;;  %v1283_v48 = vshll.u32 %v3195_v54, 16 }
 0x242   : > { %v1278_v59 = vor.u32 %v1276_v27, %v1275_v21  ;;  %v1496_v49 = vsel %vm1493_vm9, %v1297_v35, %v1430_v41  ;;  %v1290_v55 = vshll.u32 %v3159_v19, 16  ;;  %v1394_v25 = vshrl.u32 %v1371_v44, 16 }
 0x243   : > { %1445 = vrot.lane.b32.xlu0 %v1363_v57, %s2509_s25  ;;  %v1790_v33 = vrot.slane %v1782_v61, %v2572_v10  ;;  %v1797_v36 = vrot.slane %v1783_v28, %v2572_v10  ;;  %v1285_v57 = vor.u32 %v1283_v48, %v1282_v29  ;;  %v1378_v5 = vrot.slane %v3195_v54, %v2572_v10 }
 0x244   : > { %v1298_v6 = vsel %vm2799_vm2, 0, %v1278_v59 }
 0x245   : > { %1443 = vrot.lane.b32.xlu1 %v1362_v58, %s2509_s25  ;;  %v3255_v63 = vcombine.low %v1790_v33, %v1797_v36  ;;  %v1385_v58 = vrot.slane %v3159_v19, %v2572_v10  ;;  %v1299_v24 = vsel %vm2799_vm2, 0, %v1285_v57  ;;  %v1401_v28 = vshrl.u32 %v1378_v5, 16 }
 0x246   : > { %v1392_v36 = vrot.slane %v3202_v0, %v2572_v10  ;;  %v2261_v0 = vpack.c.bf16 %v3085_v50, %v3085_v50 }
 0x247   : > { %1449 = vrot.lane.b32.xlu0 %v3101_v52, %s2509_s25  ;;  %v2475_v52 = vld [vmem:[%s3401_s3 + $0xe0] sm:$0xff]   ;;  %v1408_v13 = vshrl.u32 %v1385_v58, 16  ;;  %v1411_v41 = vshll.u32 %v1385_v58, 16 }
 0x248   : > { %2355 = vmatprep.subr.bf16.mxu0 %v2475_v52  ;;  %v1397_v52 = vshll.u32 %v1371_v44, 16  ;;  %v1415_v30 = vshrl.u32 %v1392_v36, 16  ;;  %v1418_v57 = vshll.u32 %v1392_v36, 16 }
 0x249   : > { %1447 = vrot.lane.b32.xlu1 %v1364_v56, %s2509_s25  ;;  %2356 = vmatpush3.bf16.msra.mxu0 %v2477_v31  ;;  %v1396_v56 = vrot.slane %v1394_v25, 7 }
 0x24a   : > { %v1417_v59 = vrot.slane %v1415_v30, 7  ;;  %v2265_v30 = vld [vmem:[%s3402_s4] ss:$0 sm:$0xff] }
 0x24b   : > { %1453 = vrot.lane.b32.xlu0 %v3119_v17, %s2509_s25  ;;  %v2478_v17 = vld [vmem:[%s3401_s3 + $0xe8] sm:$0xff]  }
 0x24c   : > { %2357 = vmatprep.subr.bf16.mxu0 %v2478_v17 }
 0x24d   : > { %1451 = vrot.lane.b32.xlu1 %v3125_v7, %s2509_s25  ;;  %v2480_v7 = vld [vmem:[%s3401_s3 + $0xa8] sm:$0xff]  }
 0x24e   : > { %2358 = vmatpush3.bf16.msra.mxu0 %v2480_v7 }
 0x24f   : > { %1485 = vrot.lane.b32.xlu0 %v1463_v62, %s2509_s25  ;;  %2359 = vmatprep.subr.bf16.mxu0 %v2481_v40  ;;  %v1399_v40 = vor.u32 %v1397_v52, %v1396_v56 }
 0x251   : > { %1455 = vrot.lane.b32.xlu1 %v3132_v37, %s2509_s25  ;;  %v1253_v37 = vcombine.high %v3178_v45, %v3178_v45  ;;  %v1289_v45 = vrot.slane %v1287_v42, 7  ;;  %v1425_v15 = vsel %vm2799_vm2, 0, %v1399_v40  ;;  %v2488_v40 = vld [vmem:[%s3401_s3 + $0x128] sm:$0xff]  }
 0x252   : > { %2360 = vmatpush3.bf16.msra.mxu0 %v2483_v3  ;;  %v1403_v3 = vrot.slane %v1401_v28, 7 }
 0x253   : > { %1489 = vrot.lane.b32.xlu0 %v1477_v9, %s2509_s25  ;;  %v1484_v39 = vrot.slane %v1253_v37, %v2572_v10  ;;  %2361 = vmatprep.subr.bf16.mxu0 %v2484_v18  ;;  %v1292_v8 = vor.u32 %v1290_v55, %v1289_v45  ;;  %v2476_v55 = vld [vmem:[%s3401_s3 + $0x100] sm:$0xff]  }
 0x255   : > { %1487 = vrot.lane.b32.xlu1 %v1470_v32, %s2509_s25  ;;  %v1300_v61 = vsel %vm2799_vm2, 0, %v1292_v8  ;;  %v1410_v32 = vrot.slane %v1408_v13, 7 }
 0x256   : > { %2362 = vmatpush3.bf16.msra.mxu0 %v2486_v12 }
 0x257   : > { %v1413_v21 = vor.u32 %v1411_v41, %v1410_v32  ;;  %v2490_v32 = vld [vmem:[%s3401_s3 + $0x138] sm:$0xff]  }
 0x259   : > { %1491 = vrot.lane.b32.xlu1 %v1484_v39, %s2509_s25  ;;  %v1427_v48 = vsel %vm2799_vm2, 0, %v1413_v21 }
 0x274   : > { %v1442_v34 = vpop.permute.xlu0 %1441 }
 0x275   : > { %v1507_v53 = vsel %vm1493_vm9, 0, %v1442_v34  ;;  %v1208_v34 = vrot.slane %v3088_v1, %v2572_v10  ;;  %v1215_v1 = vrot.slane %v2261_v0, %v2572_v10 }
 0x276   : > { %v1563_v11 = vcombine.low %v1496_v49, %v1507_v53 }
 0x277   : > { %v1216_v25 = vcombine.high %v1208_v34, %v1208_v34 }
 0x278   : > { %v1571_v31 = vrot.slane %v1563_v11, %v2572_v10 }
 0x2af   : > { %v1432_v4 = vpop.permute.xlu1 %1431 }
 0x2b0   : > { %v1499_v22 = vsel %vm1493_vm9, %v1298_v6, %v1432_v4  ;;  %v1420_v6 = vor.u32 %v1418_v57, %v1417_v59 }
 0x2b1   : > { %v1434_v20 = vpop.permute.xlu0 %1433 }
 0x2b2   : > { %v1502_v38 = vsel %vm1493_vm9, %v1299_v24, %v1434_v20  ;;  %v1217_v24 = vcombine.high %v1215_v1, %v1215_v1  ;;  %v1428_v56 = vsel %vm2799_vm2, 0, %v1420_v6 }
 0x2b3   : > { %v1436_v43 = vpop.permute.xlu1 %1435 }
 0x2b4   : > { %v1505_v62 = vsel %vm1493_vm9, %v1300_v61, %v1436_v43 }
 0x2b5   : > { %v1446_v2 = vpop.permute.xlu0 %1445 }
 0x2b6   : > { %v1511_v26 = vsel %vm1493_vm9, %v3195_v54, %v1446_v2 }
 0x2b7   : > { %v1444_v16 = vpop.permute.xlu1 %1443  ;;  %v1611_v54 = vcombine.low %v1502_v38, %v1511_v26 }
 0x2b8   : > { %v1509_v47 = vsel %vm1493_vm9, %v3156_v46, %v1444_v16 }
 0x2b9   : > { %v1587_v60 = vcombine.low %v1499_v22, %v1509_v47  ;;  %v1450_v51 = vpop.permute.xlu0 %1449  ;;  %v1619_v18 = vrot.slane %v1611_v54, %v2572_v10  ;;  %v2479_v47 = vld [vmem:[%s3401_s3 + $0x108] sm:$0xff]  }
 0x2ba   : > { %v1516_v35 = vsel %vm1493_vm9, %v1208_v34, %v1450_v51 }
 0x2bb   : > { %v1595_v33 = vrot.slane %v1587_v60, %v2572_v10  ;;  %v1448_v46 = vpop.permute.xlu1 %1447 }
 0x2bc   : > { %v1513_v17 = vsel %vm1493_vm9, %v3159_v19, %v1448_v46  ;;  %v1404_v19 = vshll.u32 %v1378_v5, 16  ;;  %v2485_v46 = vld [vmem:[%s3401_s3 + $0x118] sm:$0xff]  }
 0x2bd   : > { %v1635_v9 = vcombine.low %v1505_v62, %v1513_v17  ;;  %v1454_v7 = vpop.permute.xlu0 %1453  ;;  %v2266_v37 = vcombine.low %v1571_v31, %v1595_v33  ;;  %v2482_v31 = vld [vmem:[%s3401_s3 + $0x110] sm:$0xff]  }
 0x2be   : > { %v1406_v29 = vor.u32 %v1404_v19, %v1403_v3  ;;  %v1522_v2 = vsel %vm1493_vm9, %v1215_v1, %v1454_v7  ;;  %v2487_v7 = vld [vmem:[%s3401_s3 + $0x120] sm:$0xff]  }
 0x2bf   : > { %v1643_v39 = vrot.slane %v1635_v9, %v2572_v10  ;;  %v1452_v12 = vpop.permute.xlu1 %1451  ;;  %v1756_v45 = vrot.slane %v2266_v37, %v2572_v10 }
 0x2c0   : > { %v1426_v5 = vsel %vm2799_vm2, 0, %v1406_v29  ;;  %v1519_v16 = vsel %vm1493_vm9, %v1216_v25, %v1452_v12 }
 0x2c1   : > { %v1486_v42 = vpop.permute.xlu0 %1485  ;;  %v2268_v4 = vcombine.low %v1619_v18, %v1643_v39 }
 0x2c2   : > { %v1528_v27 = vsel %vm1493_vm9, %v1425_v15, %v1486_v42 }
 0x2c3   : > { %v1564_v20 = vcombine.low %v1516_v35, %v1528_v27  ;;  %v1456_v44 = vpop.permute.xlu1 %1455  ;;  %v1770_v50 = vrot.slane %v2268_v4, %v2572_v10 }
 0x2c4   : > { %v1525_v38 = vsel %vm1493_vm9, %v1217_v24, %v1456_v44 }
 0x2c5   : > { %v1490_v43 = vpop.permute.xlu0 %1489  ;;  %v1779_v49 = vcombine.high %v1756_v45, %v1770_v50  ;;  %v1778_v53 = vcombine.low %v1756_v45, %v1770_v50  ;;  %v1578_v60 = vrot.slane %v1564_v20, %v2572_v10 }
 0x2c6   : > { %v1534_v58 = vsel %vm1493_vm9, %v1427_v48, %v1490_v43 }
 0x2c7   : > { %v1612_v8 = vcombine.low %v1522_v2, %v1534_v58  ;;  %v1488_v11 = vpop.permute.xlu1 %1487  ;;  %2076 = vmatprep.mubr.bf16.mxu1 %v1779_v49 }
 0x2c8   : > { %v1531_v22 = vsel %vm1493_vm9, %v1426_v5, %v1488_v11  ;;  %2077 = vmatmul.mubr.bf16.vlgmr.msra.gmra.mrb[0].mxu1 %v1778_v53 }
 0x2c9   : > { %v1588_v26 = vcombine.low %v1519_v16, %v1531_v22  ;;  %2403 = vmatpush3.bf16.msra.mxu1 %v2476_v55  ;;  %2418 = vmatprep.mubr.msk.bf16.mxu1 %vm2511_vm10, %v2510_v14  ;;  %v1626_v54 = vrot.slane %v1612_v8, %v2572_v10 }
 0x2ca   : > { %2404 = vmatprep.subr.bf16.mxu1 %v2510_v14 }
 0x2cb   : > { %v1602_v51 = vrot.slane %v1588_v26, %v2572_v10  ;;  %v1492_v13 = vpop.permute.xlu1 %1491 }
 0x2cc   : > { %v1537_v61 = vsel %vm1493_vm9, %v1428_v56, %v1492_v13 }
 0x2cd   : > { %v2267_v52 = vcombine.low %v1578_v60, %v1602_v51  ;;  %v1636_v28 = vcombine.low %v1525_v38, %v1537_v61  ;;  %2405 = vmatpush3.bf16.msra.mxu1 %v2479_v47 }
 0x2ce   : > { %2406 = vmatprep.subr.bf16.mxu1 %v2510_v14 }
 0x2cf   : > { %v1650_v33 = vrot.slane %v1636_v28, %v2572_v10  ;;  %v1763_v36 = vrot.slane %v2267_v52, %v2572_v10 }
 0x2d1   : > { %v2269_v23 = vcombine.low %v1626_v54, %v1650_v33  ;;  %2407 = vmatpush3.bf16.msra.mxu1 %v2482_v31 }
 0x2d2   : > { %2408 = vmatprep.subr.bf16.mxu1 %v2510_v14 }
 0x2d3   : > { %v1777_v62 = vrot.slane %v2269_v23, %v2572_v10  ;;  %v2489_v10 = vld [vmem:[%s3401_s3 + $0x130] sm:$0xff]  }
 0x2d5   : > { %2409 = vmatpush3.bf16.msra.mxu1 %v2485_v46  ;;  %v1780_v17 = vcombine.low %v1763_v36, %v1777_v62  ;;  %v1781_v9 = vcombine.high %v1763_v36, %v1777_v62 }
 0x2d6   : > { %2410 = vmatprep.subr.bf16.mxu1 %v2510_v14 }
 0x2d7   : > { %2117 = vmatprep.mubr.bf16.mxu0 %v1781_v9 }
 0x2d8   : > { %2118 = vmatmul.mubr.bf16.vlgmr.msra.gmra.mrb[8].mxu0 %v1780_v17 }
 0x2d9   : > { %2411 = vmatpush3.bf16.msra.mxu1 %v2487_v7 }
 0x2da   : > { %2412 = vmatprep.subr.bf16.mxu1 %v2510_v14 }
 0x2dd   : > { %2413 = vmatpush3.bf16.msra.mxu1 %v2488_v40 }
 0x2de   : > { %2414 = vmatprep.subr.bf16.mxu1 %v2510_v14 }
 0x2e1   : > { %2415 = vmatpush3.bf16.msra.mxu1 %v2489_v10 }
 0x2e2   : > { %2416 = vmatprep.subr.bf16.mxu1 %v2510_v14 }
 0x2e5   : > { %2417 = vmatpush3.bf16.msra.mxu1 %v2490_v32 }
 0x2e8   : > { %2419 = vmatmul.mubr.bf16.vlgmr.msra.gmra.mrb[4].mxu1 %v3255_v63 }
 0x39b   : > { %v2341_v37 = vpop.f32.mrb[0].mxu1 }
 0x39c   : > { %v2342_v3 = vpop.f32.mrb[1].mxu1 }
 0x39d   : > { %v2343_v18 = vadd.f32 %v2342_v3, %v2341_v37  ;;  %v2344_v39 = vpop.f32.mrb[2].mxu1 }
 0x39e   : > { %v2345_v12 = vpop.f32.mrb[3].mxu1 }
 0x39f   : > { %v2346_v41 = vadd.f32 %v2345_v12, %v2344_v39  ;;  %v2079_v19 = vadd.f32 %v2343_v18, %v2265_v30 }
 0x3a1   : > { %v2082_v14 = vadd.f32 %v2346_v41, %v2265_v30 }
 0x3ab   : > { %v2363_v0 = vpop.f32.mrb[8].mxu0 }
 0x3ac   : > { %v2364_v34 = vpop.f32.mrb[9].mxu0 }
 0x3ad   : > { %v2365_v15 = vadd.f32 %v2364_v34, %v2363_v0  ;;  %v2366_v42 = vpop.f32.mrb[10].mxu0 }
 0x3ae   : > { %v2367_v21 = vpop.f32.mrb[11].mxu0 }
 0x3af   : > { %v2368_v4 = vadd.f32 %v2367_v21, %v2366_v42  ;;  %v2120_v35 = vadd.f32 %v2365_v15, %v2079_v19 }
 0x3b1   : > { %v2123_v63 = vadd.f32 %v2368_v4, %v2082_v14 }
 0x3bb   : > { %v2160_v27 = vpop.f32.mrb[4].mxu1 }
 0x3bc   : > { %v2161_v29 = vadd.f32 %v2160_v27, %v2120_v35  ;;  %v2420_v20 = vpop.f32.mrb[5].mxu1 }
 0x3bd   : > { %v2163_v44 = vpop.f32.mrb[6].mxu1 }
 0x3be   : > { %v2164_v45 = vadd.f32 %v2163_v44, %v2123_v63  ;;  %v2421_v50 = vpop.f32.mrb[7].mxu1  ;;  %v2167_v59 = vmax.f32 %v2161_v29, 0.0 }
 0x3c0   : > { %v2168_v1 = vmax.f32 %v2164_v45, 0.0 }
 0x3c2   : > { %v2169_v48 = vadd.f32 %v2168_v1, %v2167_v59 }
 0x3c4   : > { %v2170_v43 = vrot.slane %v2169_v48, 4 }
 0x3c6   : > { %v2171_v49 = vadd.f32 %v2170_v43, %v2169_v48 }
 0x3c8   : > { %v2172_v53 = vrot.slane %v2171_v49, 2 }
 0x3ca   : > { %v2173_v55 = vadd.f32 %v2172_v53, %v2171_v49 }
 0x3cc   : > { %v2174_v57 = vrot.slane %v2173_v55, 1 }
 0x3ce   : > { %v2175_v2 = vadd.f32 %v2174_v57, %v2173_v55 }
 0x3d0   : > { %2176 = vadd.xlane.f32.xlu0 %v2175_v2 }
 0x45d   : > { %v2177_v25 = vpop.xlane.xlu0 %2176 }
 0x45e   : > { %v2179_v58 = vmul.f32 0.00048828125, %v2177_v25 }
 0x460   : > { %v2180_v8 = vsub.f32 %v2167_v59, %v2179_v58  ;;  %v2181_v5 = vsub.f32 %v2168_v1, %v2179_v58 }
 0x462   : > { %v2182_v11 = vmul.f32 %v2180_v8, %v2180_v8  ;;  %v2183_v6 = vmul.f32 %v2181_v5, %v2181_v5 }
 0x464   : > { %v2184_v16 = vadd.f32 %v2183_v6, %v2182_v11 }
 0x466   : > { %v2185_v22 = vrot.slane %v2184_v16, 4 }
 0x468   : > { %v2186_v26 = vadd.f32 %v2185_v22, %v2184_v16 }
 0x46a   : > { %v2187_v47 = vrot.slane %v2186_v26, 2 }
 0x46c   : > { %v2188_v24 = vadd.f32 %v2187_v47, %v2186_v26 }
 0x46e   : > { %v2189_v60 = vrot.slane %v2188_v24, 1 }
 0x470   : > { %v2190_v51 = vadd.f32 %v2189_v60, %v2188_v24 }
 0x472   : > { %2191 = vadd.xlane.f32.xlu1 %v2190_v51 }
 0x4ff   : > { %v2192_v56 = vpop.xlane.xlu1 %2191 }
 0x500   : > { %v2194_v13 = vmul.f32 0.0004885198, %v2192_v56 }
 0x502   : > { %2196 = vst.msk [vmem:[%s220_s22] sm:$0x1] %vm2195_vm11, %v2194_v13 }
 0x503 PF: > { %s15_s18 = sadd.s32 1, %s2497_s18  }
 0x504   : > { %p12_p4 = scmp.ge.s32.totalorder %s15_s18, 4  }
 0x506   :  { %14 = sbr.rel (!%p12_p4) target bundleno = 1 (0x1), region = 70 }

</bundles_post_ra>
